<compile_context>
chip_gen: v6e
topology: v6e:2x2x1
jax: 0.10.0
libtpu: 0.0.40
codegen_flags: <defaults>
</compile_context>

<pallas_src>
import functools

import jax
import jax.numpy as jnp
from jax import lax
from jax.experimental import pallas as pl
from jax.experimental.pallas import tpu as pltpu


def _round_up(x, m):
    return ((x + m - 1) // m) * m


def _device_kind():
    try:
        return jax.devices()[0].device_kind.lower()
    except Exception:
        return ""


def _device_tile_target_and_cap():
    """(default token-tile rows, VMEM byte budget) per TPU generation."""
    kind = _device_kind()
    if "v7" in kind:                        # 64 MiB physical VMEM per TensorCore
        return 2048, 48 * 1024 * 1024
    if "v5 lite" in kind or "v5e" in kind:  # 128 MiB physical, 16 MiB scoped default
        return 1024, 96 * 1024 * 1024
    if "v6" in kind:                        # 128 MiB physical
        return 2048, 96 * 1024 * 1024
    return 1024, 64 * 1024 * 1024


def _embedding_kernel(tok_ref, w1_ref, w2c_ref, w2e_ref, c_ref, out_ref, *,
                      vocab_pad, use_bf16_matmul):
    tn = tok_ref.shape[0]
    t = tok_ref[:, 0:1]                               # (TN, 1) time   (f32)
    v = tok_ref[:, 1:2]                               # (TN, 1) value  (f32)
    var = tok_ref[:, 2:3].astype(jnp.int32)           # (TN, 1) variable index

    mxu_dtype = jnp.bfloat16 if use_bf16_matmul else jnp.float32

    # Fused first layer of both ContinuousValueEmbeddings (Linear(1, 2d) + tanh):
    #   lanes [0, 2d)      -> time branch
    #   lanes [W2, W2+2d)  -> value branch
    # Padded lanes stay tanh(0) = 0 and hit all-zero rows of w2c below.
    # Computed directly in the MXU dtype (bf16-native EUP on v6e/v7x; no
    # separate f32->bf16 cast pass before the matmul).
    tt = t.astype(mxu_dtype)
    vv = v.astype(mxu_dtype)
    h = jnp.tanh(tt * w1_ref[0:1, :] + vv * w1_ref[1:2, :] + w1_ref[2:3, :])   # (TN, 2*W2)

    # VariableEmbedding gather as one-hot (0/1 is exact in bf16 too).
    # NOTE: out-of-range indices silently produce a zero embedding (PyTorch raises).
    oh = (lax.broadcasted_iota(jnp.int32, (tn, vocab_pad), 1) == var
          ).astype(mxu_dtype)                                                   # (TN, Vp)

    # Two MXU dots against resident weights (no concatenated slab materialized).
    mm = (jnp.dot(h, w2c_ref[...], preferred_element_type=jnp.float32)
          + jnp.dot(oh, w2e_ref[...], preferred_element_type=jnp.float32))      # (TN, d)
    mm = mm + c_ref[2:3, :]                                                     # U_t.b + U_v.b

    # SineActivation(time): lanes [0, d-1) -> sin(t*w + b), last lane linear.
    # c_ref row 3 is the hoisted 0/1 lane mask (1 for sin lanes, 0 for last lane).
    z = t * c_ref[0:1, :] + c_ref[1:2, :]
    sin_t = z + c_ref[3:4, :] * (jnp.sin(z) - z)

    out_ref[...] = (mm + sin_t).astype(out_ref.dtype)


def embedding_forward(time, variable, value, params, *, tile_n=None,
                      use_bf16_matmul=None, out_dtype=jnp.float32):
    """time, value: f32 (B, S); variable: int (B, S) -> (B, S, d_model) in out_dtype."""
    B, S = time.shape
    N = B * S
    d = params["cve_t_U_w"].shape[1]
    V = params["emb"].shape[0]
    assert d >= 2, "SineActivation packing needs d_model >= 2"
    # TODO(synk): for large vocabularies switch the one-hot gather to a
    # scalar-prefetched row-gather (pl.Element index_map) or manual DMA gather.
    assert V <= 1024, "one-hot embedding gather intended for small vocabularies"

    kind = _device_kind()
    if use_bf16_matmul is None:
        # v7x MXU/EUP are bf16-native (no f32 MXU path); default bf16 there only.
        use_bf16_matmul = "v7" in kind

    W2 = _round_up(2 * d, 128)   # lane-aligned width of each CVE tanh segment
    Vp = _round_up(V, 128)       # lane-aligned one-hot width
    d_pad = _round_up(d, 128)
    w_dtype = jnp.bfloat16 if use_bf16_matmul else jnp.float32
    wbytes = 2 if use_bf16_matmul else 4
    out_bytes = jnp.dtype(out_dtype).itemsize

    # ---- tile selection + VMEM budget (generation aware) --------------------
    tgt_tile, vmem_cap = _device_tile_target_and_cap()
    user_tile = tile_n is not None
    tile_n = tgt_tile if tile_n is None else tile_n
    tile_n = max(8, (tile_n // 8) * 8)
    tile_n = min(tile_n, _round_up(N, 8))
    if not user_tile and N >= 256:
        # Keep >= 2 grid steps so both v7x TensorCores get tiles to work on.
        tile_n = min(tile_n, max(128, _round_up((N + 1) // 2, 8)))

    def vmem_estimate(tn):
        f32 = 4
        tok_blk = tn * 128 * f32                       # (tn, 3) block, lane-padded (conservative)
        out_blk = tn * d_pad * out_bytes
        weights = ((8 * 2 * W2 + 2 * W2 * d_pad + Vp * d_pad) * wbytes
                   + 8 * d_pad * f32)                  # w1 + w2c + w2e + consts
        interm = tn * (2 * W2 + Vp) * wbytes + tn * 3 * d_pad * f32
        # Token/output blocks are double-buffered by the pipeline; constant-index
        # weight blocks (index_map always (0, 0)) are counted once.
        return 2 * (tok_blk + out_blk) + weights + interm

    while tile_n > 8 and vmem_estimate(tile_n) > vmem_cap:
        tile_n = max(8, ((tile_n // 2) // 8) * 8)
    vmem_limit = int(min(max(int(1.5 * vmem_estimate(tile_n)), 32 * 1024 * 1024),
                         vmem_cap))

    num_tiles = pl.cdiv(N, tile_n)
    N_pad = num_tiles * tile_n

    # ---- pack per-token inputs into one (N_pad, 3) block ---------------------
    tok = jnp.stack(
        [time.reshape(N).astype(jnp.float32),
         value.reshape(N).astype(jnp.float32),
         variable.reshape(N).astype(jnp.float32)],     # small ints exact in f32
        axis=-1)
    if N_pad > N:
        tok = jnp.pad(tok, ((0, N_pad - N), (0, 0)))   # pad rows use variable==0

    # ---- pack weights (layout plumbing, done once in the wrapper) ------------
    # w1: row0 multiplies time, row1 multiplies value, row2 is the bias.
    w1 = jnp.zeros((3, 2 * W2), jnp.float32)
    w1 = w1.at[0, : 2 * d].set(params["cve_t_W_w"][0])
    w1 = w1.at[1, W2: W2 + 2 * d].set(params["cve_v_W_w"][0])
    w1 = w1.at[2, : 2 * d].set(params["cve_t_W_b"][0])
    w1 = w1.at[2, W2: W2 + 2 * d].set(params["cve_v_W_b"][0])

    # w2c = [U_time ; U_value] zero-padded to lane-aligned segments; w2e = table.
    w2c = jnp.zeros((2 * W2, d), jnp.float32)
    w2c = w2c.at[: 2 * d].set(params["cve_t_U_w"])
    w2c = w2c.at[W2: W2 + 2 * d].set(params["cve_v_U_w"])
    w2e = jnp.zeros((Vp, d), jnp.float32)
    w2e = w2e.at[:V].set(params["emb"])

    if use_bf16_matmul:
        # Pre-cast once in the wrapper: no per-tile weight casts, half the
        # resident weight VMEM and half the weight-block DMA bytes.
        w1 = w1.astype(w_dtype)
        w2c = w2c.astype(w_dtype)
        w2e = w2e.astype(w_dtype)

    # consts: row0 sine w, row1 sine b, row2 = U_t.b + U_v.b, row3 = sine lane mask.
    sine_mask = (jnp.arange(d) < d - 1).astype(jnp.float32)[None, :]
    consts = jnp.concatenate(
        [params["sin_w"], params["sin_b"],
         params["cve_t_U_b"] + params["cve_v_U_b"], sine_mask], axis=0)  # (4, d)

    kernel = functools.partial(_embedding_kernel, vocab_pad=Vp,
                               use_bf16_matmul=use_bf16_matmul)

    out = pl.pallas_call(
        kernel,
        out_shape=jax.ShapeDtypeStruct((N_pad, d), out_dtype),
        grid_spec=pltpu.PrefetchScalarGridSpec(
            num_scalar_prefetch=0,
            grid=(num_tiles,),
            in_specs=[
                pl.BlockSpec((tile_n, 3), lambda i: (i, 0)),     # packed tokens
                pl.BlockSpec((3, 2 * W2), lambda i: (0, 0)),     # fused first layer
                pl.BlockSpec((2 * W2, d), lambda i: (0, 0)),     # fused CVE second layer
                pl.BlockSpec((Vp, d), lambda i: (0, 0)),         # embedding table
                pl.BlockSpec((4, d), lambda i: (0, 0)),          # sine w/b + U biases + mask
            ],
            out_specs=pl.BlockSpec((tile_n, d), lambda i: (i, 0)),
        ),
        compiler_params=pltpu.CompilerParams(
            dimension_semantics=("parallel",),
            vmem_limit_bytes=vmem_limit),
    )(tok, w1, w2c, w2e, consts)

    return out[:N].reshape(B, S, d)


def init_params(key, d_model, num_variables):
    """Deterministic synthetic parameters matching the PyTorch module shapes."""
    ks = jax.random.split(key, 12)
    n = lambda k, shape, s=0.1: (s * jax.random.normal(k, shape)).astype(jnp.float32)
    V = num_variables + 1
    params = {
        # ContinuousValueEmbedding (time): W = Linear(1, 2d), U = Linear(2d, d)
        "cve_t_W_w": n(ks[0], (1, 2 * d_model)),
        "cve_t_W_b": n(ks[1], (1, 2 * d_model)),
        "cve_t_U_w": n(ks[2], (2 * d_model, d_model)),
        "cve_t_U_b": n(ks[3], (1, d_model)),
        # ContinuousValueEmbedding (value)
        "cve_v_W_w": n(ks[4], (1, 2 * d_model)),
        "cve_v_W_b": n(ks[5], (1, 2 * d_model)),
        "cve_v_U_w": n(ks[6], (2 * d_model, d_model)),
        "cve_v_U_b": n(ks[7], (1, d_model)),
        # SineActivation(1, d): w (1, d-1), w0 (1, 1), b (d-1), b0 (1) packed (w|w0)
        "sin_w": jnp.concatenate([n(ks[8], (1, d_model - 1), 1.0),
                                  n(ks[9], (1, 1), 1.0)], axis=1),
        "sin_b": jnp.concatenate([n(ks[10], (1, d_model - 1), 1.0),
                                  n(ks[11], (1, 1), 1.0)], axis=1),
        # VariableEmbedding: Embedding(num_variables + 1, d)
        "emb": n(jax.random.fold_in(key, 99), (V, d_model), 1.0),
    }
    return params


def reference_forward(time, variable, value, params):
    """Pure-JAX reference mirroring the PyTorch forward (sinusoidal='both')."""
    d = params["cve_t_U_w"].shape[1]
    t = time[..., None].astype(jnp.float32)
    v = value[..., None].astype(jnp.float32)

    cve_t = jnp.tanh(t * params["cve_t_W_w"][0] + params["cve_t_W_b"][0])
    cve_t = cve_t @ params["cve_t_U_w"] + params["cve_t_U_b"][0]

    cve_v = jnp.tanh(v * params["cve_v_W_w"][0] + params["cve_v_W_b"][0])
    cve_v = cve_v @ params["cve_v_U_w"] + params["cve_v_U_b"][0]

    z = t * params["sin_w"][0] + params["sin_b"][0]
    sin_t = jnp.concatenate([jnp.sin(z[..., : d - 1]), z[..., d - 1:]], axis=-1)

    var_e = params["emb"][variable]
    return cve_t + sin_t + cve_v + var_e


if __name__ == "__main__":
    B, S = 4, 32
    d_model = 128            # multiple of 128 -> lane-dense (unmasked) output stores
    num_variables = 6

    key = jax.random.PRNGKey(0)
    k_t, k_v, k_i, k_p = jax.random.split(key, 4)

    time = jax.random.uniform(k_t, (B, S), dtype=jnp.float32) * 10.0
    value = jax.random.normal(k_v, (B, S), dtype=jnp.float32)
    variable = jax.random.randint(k_i, (B, S), 0, num_variables + 1, dtype=jnp.int32)

    params = init_params(k_p, d_model, num_variables)
    ref = reference_forward(time, variable, value, params)

    # Strict f32 path; small explicit tile so the 1-D grid has >1 step
    # (pipelining and, on v7x, work for both TensorCores: 128 tokens -> 2 tiles).
    out = embedding_forward(time, variable, value, params, tile_n=64,
                            use_bf16_matmul=False)
    out = jax.block_until_ready(out)
    assert out.shape == (B, S, d_model)
    assert jnp.allclose(out, ref, atol=1e-4, rtol=1e-4), "mismatch vs JAX reference (f32)"

    # bf16 MXU/EUP path (v6e/v7x throughput lever) -- looser tolerance by design.
    out_bf16 = embedding_forward(time, variable, value, params, tile_n=64,
                                 use_bf16_matmul=True)
    out_bf16 = jax.block_until_ready(out_bf16)
    assert jnp.allclose(out_bf16, ref, atol=1e-1, rtol=1e-1), "mismatch (bf16 matmul)"

    print("KERNEL_OK")
</pallas_src>

<mosaic_0001>
module attributes {stable_mosaic.version = 11 : i64} {
  func.func @_embedding_kernel(%arg0: i32, %arg1: memref<64x3xf32, #tpu.memory_space<vmem>>, %arg2: memref<3x512xf32, #tpu.memory_space<vmem>>, %arg3: memref<512x128xf32, #tpu.memory_space<vmem>>, %arg4: memref<128x128xf32, #tpu.memory_space<vmem>>, %arg5: memref<4x128xf32, #tpu.memory_space<vmem>>, %arg6: memref<64x128xf32, #tpu.memory_space<vmem>>) attributes {dimension_semantics = [#tpu.dimension_semantics<parallel>], iteration_bounds = array<i64: 2>, scalar_prefetch = 0 : i64, scratch_operands = 0 : i64, tpu.core_type = #tpu.core_type<tc>, window_params = [{transform_indices = @transform_0, window_bounds = array<i64: 64, 3>}, {pipeline_mode = #tpu.pipeline_mode<synchronous>, transform_indices = @transform_1, window_bounds = array<i64: 3, 512>}, {pipeline_mode = #tpu.pipeline_mode<synchronous>, transform_indices = @transform_2, window_bounds = array<i64: 512, 128>}, {pipeline_mode = #tpu.pipeline_mode<synchronous>, transform_indices = @transform_3, window_bounds = array<i64: 128, 128>}, {pipeline_mode = #tpu.pipeline_mode<synchronous>, transform_indices = @transform_4, window_bounds = array<i64: 4, 128>}, {transform_indices = @transform_5, window_bounds = array<i64: 64, 128>}]} {
    %c0 = arith.constant 0 : index
    %c0_0 = arith.constant 0 : index
    %0 = vector.load %arg1[%c0, %c0_0] : memref<64x3xf32, #tpu.memory_space<vmem>>, vector<64x1xf32>
    %c0_1 = arith.constant 0 : index
    %c1 = arith.constant 1 : index
    %1 = vector.load %arg1[%c0_1, %c1] : memref<64x3xf32, #tpu.memory_space<vmem>>, vector<64x1xf32>
    %c0_2 = arith.constant 0 : index
    %c2 = arith.constant 2 : index
    %2 = vector.load %arg1[%c0_2, %c2] : memref<64x3xf32, #tpu.memory_space<vmem>>, vector<64x1xf32>
    %3 = arith.fptosi %2 : vector<64x1xf32> to vector<64x1xi32>
    %c0_3 = arith.constant 0 : index
    %c0_4 = arith.constant 0 : index
    %4 = vector.load %arg2[%c0_3, %c0_4] : memref<3x512xf32, #tpu.memory_space<vmem>>, vector<1x512xf32>
    %5 = vector.broadcast %0 : vector<64x1xf32> to vector<64x512xf32>
    %6 = vector.broadcast %4 : vector<1x512xf32> to vector<64x512xf32>
    %7 = arith.mulf %5, %6 : vector<64x512xf32>
    %c1_5 = arith.constant 1 : index
    %c0_6 = arith.constant 0 : index
    %8 = vector.load %arg2[%c1_5, %c0_6] : memref<3x512xf32, #tpu.memory_space<vmem>>, vector<1x512xf32>
    %9 = vector.broadcast %1 : vector<64x1xf32> to vector<64x512xf32>
    %10 = vector.broadcast %8 : vector<1x512xf32> to vector<64x512xf32>
    %11 = arith.mulf %9, %10 : vector<64x512xf32>
    %12 = arith.addf %7, %11 : vector<64x512xf32>
    %c2_7 = arith.constant 2 : index
    %c0_8 = arith.constant 0 : index
    %13 = vector.load %arg2[%c2_7, %c0_8] : memref<3x512xf32, #tpu.memory_space<vmem>>, vector<1x512xf32>
    %14 = vector.broadcast %13 : vector<1x512xf32> to vector<64x512xf32>
    %15 = arith.addf %12, %14 : vector<64x512xf32>
    %16 = math.tanh %15 : vector<64x512xf32>
    %17 = tpu.iota {dimensions = array<i32: 1>} : vector<64x128xi32>
    %18 = vector.broadcast %3 : vector<64x1xi32> to vector<64x128xi32>
    %19 = arith.cmpi eq, %17, %18 : vector<64x128xi32>
    %20 = arith.extui %19 : vector<64x128xi1> to vector<64x128xi32>
    %21 = arith.sitofp %20 : vector<64x128xi32> to vector<64x128xf32>
    %c0_9 = arith.constant 0 : index
    %c0_10 = arith.constant 0 : index
    %22 = vector.load %arg3[%c0_9, %c0_10] : memref<512x128xf32, #tpu.memory_space<vmem>>, vector<512x128xf32>
    %cst = arith.constant dense<0.000000e+00> : vector<64x128xf32>
    %23 = tpu.matmul %16, %22, %cst {dimension_numbers = #tpu.dot_dimension_numbers<[1], [0], [0], [1], [0, 0, 1, 1], [], []>} : vector<64x512xf32>, vector<512x128xf32>, vector<64x128xf32> -> vector<64x128xf32>
    %c0_11 = arith.constant 0 : index
    %c0_12 = arith.constant 0 : index
    %24 = vector.load %arg4[%c0_11, %c0_12] : memref<128x128xf32, #tpu.memory_space<vmem>>, vector<128x128xf32>
    %cst_13 = arith.constant dense<0.000000e+00> : vector<64x128xf32>
    %25 = tpu.matmul %21, %24, %cst_13 {dimension_numbers = #tpu.dot_dimension_numbers<[1], [0], [0], [1], [0, 0, 1, 1], [], []>} : vector<64x128xf32>, vector<128x128xf32>, vector<64x128xf32> -> vector<64x128xf32>
    %26 = arith.addf %23, %25 : vector<64x128xf32>
    %c2_14 = arith.constant 2 : index
    %c0_15 = arith.constant 0 : index
    %27 = vector.load %arg5[%c2_14, %c0_15] : memref<4x128xf32, #tpu.memory_space<vmem>>, vector<1x128xf32>
    %28 = vector.broadcast %27 : vector<1x128xf32> to vector<64x128xf32>
    %29 = arith.addf %26, %28 : vector<64x128xf32>
    %c0_16 = arith.constant 0 : index
    %c0_17 = arith.constant 0 : index
    %30 = vector.load %arg5[%c0_16, %c0_17] : memref<4x128xf32, #tpu.memory_space<vmem>>, vector<1x128xf32>
    %31 = vector.broadcast %0 : vector<64x1xf32> to vector<64x128xf32>
    %32 = vector.broadcast %30 : vector<1x128xf32> to vector<64x128xf32>
    %33 = arith.mulf %31, %32 : vector<64x128xf32>
    %c1_18 = arith.constant 1 : index
    %c0_19 = arith.constant 0 : index
    %34 = vector.load %arg5[%c1_18, %c0_19] : memref<4x128xf32, #tpu.memory_space<vmem>>, vector<1x128xf32>
    %35 = vector.broadcast %34 : vector<1x128xf32> to vector<64x128xf32>
    %36 = arith.addf %33, %35 : vector<64x128xf32>
    %c3 = arith.constant 3 : index
    %c0_20 = arith.constant 0 : index
    %37 = vector.load %arg5[%c3, %c0_20] : memref<4x128xf32, #tpu.memory_space<vmem>>, vector<1x128xf32>
    %38 = math.sin %36 : vector<64x128xf32>
    %39 = arith.subf %38, %36 : vector<64x128xf32>
    %40 = vector.broadcast %37 : vector<1x128xf32> to vector<64x128xf32>
    %41 = arith.mulf %40, %39 : vector<64x128xf32>
    %42 = arith.addf %36, %41 : vector<64x128xf32>
    %43 = arith.addf %29, %42 : vector<64x128xf32>
    %c0_21 = arith.constant 0 : index
    %c0_22 = arith.constant 0 : index
    %44 = vector.load %arg6[%c0_21, %c0_22] : memref<64x128xf32, #tpu.memory_space<vmem>>, vector<64x128xf32>
    tpu.vector_store %arg6[%c0_21, %c0_22], %43 {strides = array<i32>} : memref<64x128xf32, #tpu.memory_space<vmem>>, vector<64x128xf32>,
    return
  }
  func.func @transform_0(%arg0: i32) -> (i32, i32) {
    %c0_i32 = arith.constant 0 : i32
    %c0_i32_0 = arith.constant 0 : i32
    return %arg0, %c0_i32 : i32, i32
  }
  func.func @transform_1(%arg0: i32) -> (i32, i32) {
    %c0_i32 = arith.constant 0 : i32
    %c0_i32_0 = arith.constant 0 : i32
    %c0_i32_1 = arith.constant 0 : i32
    return %c0_i32, %c0_i32_0 : i32, i32
  }
  func.func @transform_2(%arg0: i32) -> (i32, i32) {
    %c0_i32 = arith.constant 0 : i32
    %c0_i32_0 = arith.constant 0 : i32
    %c0_i32_1 = arith.constant 0 : i32
    return %c0_i32, %c0_i32_0 : i32, i32
  }
  func.func @transform_3(%arg0: i32) -> (i32, i32) {
    %c0_i32 = arith.constant 0 : i32
    %c0_i32_0 = arith.constant 0 : i32
    %c0_i32_1 = arith.constant 0 : i32
    return %c0_i32, %c0_i32_0 : i32, i32
  }
  func.func @transform_4(%arg0: i32) -> (i32, i32) {
    %c0_i32 = arith.constant 0 : i32
    %c0_i32_0 = arith.constant 0 : i32
    %c0_i32_1 = arith.constant 0 : i32
    return %c0_i32, %c0_i32_0 : i32, i32
  }
  func.func @transform_5(%arg0: i32) -> (i32, i32) {
    %c0_i32 = arith.constant 0 : i32
    %c0_i32_0 = arith.constant 0 : i32
    return %arg0, %c0_i32 : i32, i32
  }
}

</mosaic_0001>

<bundles_post_ra>
// kernel: tpu_custom_call.1
= control target key start
LH: loop header
LB: loop body
LE: loop exit
PB: predicated region body
PF: predicated region fallthrough
CT: control target
= control target key end

     0   :  { %10 = vsyncpa [#allocation3], 0  ;;  %s4504_s0 = inlined_call_operand.vmem [shape: f32[128,3], index: 0, kind: input, shape index: {}]   ;;  %s4505_s1 = inlined_call_operand.hbm [shape: f32[3,512], index: 1, kind: input, shape index: {}]   ;;  %s4506_s2 = inlined_call_operand.hbm [shape: f32[512,128], index: 2, kind: input, shape index: {}]   ;;  %s4507_s3 = inlined_call_operand.vmem [shape: f32[128,128], index: 3, kind: input, shape index: {}]   ;;  %s4508_s4 = inlined_call_operand.vmem [shape: f32[4,128], index: 4, kind: input, shape index: {}]   ;;  %s4509_s5 = inlined_call_operand.hbm [shape: f32[128,128], index: 5, kind: output, shape index: {}]  }
   0x1   :  { %11 = vsyncpa [#allocation6], 0 }
   0x2   :  { %12 = vsyncpa [#allocation4], 0 }
   0x3   :  { %14 = vsyncpa [#allocation4 + $0x1], 0  ;;  %s2710_s18 = smov 0   ;;  %s2712_s19 = smov 0  }
   0x4   :  { %s2714_s20 = smov 0   ;;  %s2716_s21 = smov 0  }
   0x5 LB: > { %s2731_s22 = sadd.s32 4294967295, %s2661_s21   ;;  %s2029_s23 = sadd.s32 4294967294, %s2661_s21   ;;  %s2661_s21 = sphi %s2716_s21, %s4607_s21   ;;  %s2657_s20 = sphi %s2714_s20, %s4606_s20   ;;  %s2653_s19 = sphi %s2712_s19, %s4605_s19   ;;  %s2649_s18 = sphi %s2710_s18, %s4604_s18  }
   0x6   : > { %s2735_s24 = sadd.s32 1, %s2661_s21   ;;  %s137_s25 = sadd.s32 1, %s2657_s20 }
   0x7   : > { %s134_s26 = ssub.s32 %s2661_s21, %s2735_s24  ;;  %p147_p0 = scmp.ne.s32.totalorder %s2657_s20, %s2653_s19 }
   0x8   : > { %p135_p1 = scmp.eq.s32.totalorder %s134_s26, 0  ;;  %p148_p2 = scmp.eq.s32.totalorder %s2731_s22, 1 }
   0x9   : > { %p153_p3 = scmp.ne.s32.totalorder %s2653_s19, %s2649_s18  ;;  %p154_p4 = scmp.eq.s32.totalorder %s2029_s23, 1 }
   0xa   : > { %s2746_s27 = scalar_select %p135_p1, %s2657_s20, %s137_s25  }
   0xb   : > { %p2748_p5 = por %p148_p2, %p147_p0  ;;  %p2752_p6 = por %p154_p4, %p153_p3 }
   0xc   : > { %p2030_p7 = scmp.ge.s32.totalorder %s2661_s21, 1  ;;  %p161_p8 = scmp.lt.s32.totalorder %s2661_s21, 3 }
   0xd   : > { %s4544_s28 = scalar_select %p2748_p5, 1, 0 }
   0xe   : > { %s4545_s29 = scalar_select %p2752_p6, 1, 0 }
   0xf   : > { %p4510_p9 = scmp.eq.s32.totalorder %s2731_s22, 0  ;;  %p2759_p10 = pnand %p2030_p7, %p161_p8 }
  0x10   : > { %s2663_s6 = smov [#allocation2]   ;;  %s2664_s8 = smov [#allocation5]  }
  0x11   : > { %s4546_s30 = scalar_select %p2759_p10, 1, 0 }
  0x12   : > { %s174_s7 = sshll.u32 %s2663_s6, 4  ;;  %p2368_p11 = pneg %p2759_p10  ;;  %s175_s7 = int_to_ptr.vmem [resolvable:$true] %s174_s7 }
  0x13   : > { %s184_s9 = sshll.u32 %s2664_s8, 4  ;;  %s2552_s11 = scalar_lea.vmem %s175_s7, 256  ;;  %s185_s9 = int_to_ptr.vmem [resolvable:$true] %s184_s9 }
  0x14   : > { %p2767_p12 = pnand %p4510_p9, %p2368_p11  ;;  %p2553_p0 = scmp.ne.s32.totalorder %s175_s7, %s2552_s11 }
  0x15   : > { %p2560_p3 = scmp.lt.s32.totalorder %s175_s7, %s175_s7  ;;  %p2561_p4 = scmp.lt.s32.totalorder %s2552_s11, %s2552_s11 }
  0x16   : > { %p2543_p13 = pneg %p2767_p12 }
  0x17   : > { %p2562_p7 = por %p2561_p4, %p2560_p3 }
  0x18   : > { %p2555_p1 = pnand %p2553_p0, %p2543_p13 }
  0x1a   : > { %p2556_p2 = pneg %p2555_p1 }
  0x1c   : > { %p2563_p8 = pnand %p2562_p7, %p2556_p2 }
  0x1e   : > { %2566 = shalt.err (!%p2563_p8)
}
  0x1f   : > { %2371 = dma.hbm_to_vmem [thread:$0]  (!%p2767_p12), %s4505_s1, 256, %s175_s7, [#allocation3]  }
  0x20   : > { %s2578_s14 = scalar_lea.vmem %s185_s9, 8192  ;;  %p2586_p0 = scmp.lt.s32.totalorder %s185_s9, %s185_s9 }
  0x21   : > { %p2579_p11 = scmp.ne.s32.totalorder %s185_s9, %s2578_s14  ;;  %p2587_p1 = scmp.lt.s32.totalorder %s2578_s14, %s2578_s14 }
  0x23   : > { %p2581_p9 = pnand %p2579_p11, %p2543_p13  ;;  %p2588_p5 = por %p2587_p1, %p2586_p0 }
  0x25   : > { %p2582_p6 = pneg %p2581_p9 }
  0x27   : > { %p2589_p10 = pnand %p2588_p5, %p2582_p6 }
  0x29   : > { %2592 = shalt.err (!%p2589_p10)
}
  0x2a   : > { %s2665_s15 = smov 128   ;;  %s2666_s16 = smov 8  }
  0x2b   : > { %2374 = dma.hbm_to_vmem [thread:$0]  (!%p2767_p12), %s4506_s2, 8192, %s185_s9, [#allocation6], %s2665_s15, %s2665_s15, %s2666_s16  }
  0x2c   : > { %p4548_p2 = scmp.ne.s32.totalorder %s4546_s30, 0 }
  0x2e   : > { %215 = sbr.rel (%p4548_p2) target bundleno = 493 (0x1ed), region = 40 }
  0x33   : > { %p4549_p3 = scmp.eq.s32.totalorder %s2731_s22, 0 }
  0x35   : > { %2636 = dma.done.wait (%p4549_p3), [#allocation3], 256   ;;  %p4550_p9 = pmov %p4549_p3 }
  0x36   : > { %p4551_p5 = pmov %p4549_p3 }
  0x37   : > { %2638 = vsyncadd (%p4550_p9), [#allocation3], 4294967040 }
  0x38   : > { %2640 = dma.done.wait (%p4551_p5), [#allocation6], 8192   ;;  %p4552_p6 = pmov %p4549_p3 }
  0x39   : > { %s2038_s25 = sshll.u32 %s2731_s22, 3  ;;  %v2667_v0 = vmov 0   ;;  %v651_v3 = vld [vmem:[#allocation5 + $0xf8] sm:$0xff]  ;;  %v699_v5 = vld [vmem:[%s4507_s3 + $0x78] sm:$0xff]  ;;  %v650_v6 = vld [vmem:[#allocation5 + $0xf0] sm:$0xff]  ;;  %v2668_v7 = vmov 1  }
  0x3a   : > { %2642 = vsyncadd (%p4552_p6), [#allocation6], 4294959104  ;;  %2434 = vset.pattern.permute.xlu1 %v2667_v0  ;;  %2432 = vset.pattern.permute.xlu0 %v2667_v0  ;;  %p248_p10 = scmp.lt.s32.totalorder %s2038_s25, 15  ;;  %v635_v4 = vld [vmem:[#allocation5 + $0x78] sm:$0xff]  ;;  %v634_v8 = vld [vmem:[#allocation5 + $0x70] sm:$0xff]  ;;  %v2669_v38 = vmov 2  }
  0x3b   : > { %2122 = vmatprep.subr.mxu1 %v651_v3  ;;  %2234 = vmatprep.subr.mxu0 %v699_v5  ;;  %v698_v9 = vld [vmem:[%s4507_s3 + $0x70] sm:$0xff]  ;;  %v649_v10 = vld [vmem:[#allocation5 + $0xe8] sm:$0xff]  ;;  %v697_v14 = vld [vmem:[%s4507_s3 + $0x68] sm:$0xff]  ;;  %s244_s16 = sand.u32 1, %s2653_s19   ;;  %s2097_s30 = sshll.u32 %s2731_s22, 10 }
  0x3c   : > { %s4609_s25 = smov (!%p248_p10, %s2038_s25), 15  ;;  %2123 = vmatpush3.msra.mxu1 %v635_v4  ;;  %2235 = vmatpush3.msra.mxu0 %v699_v5  ;;  %v633_v12 = vld [vmem:[#allocation5 + $0x68] sm:$0xff]  ;;  %v648_v13 = vld [vmem:[#allocation5 + $0xe0] sm:$0xff]  ;;  %v647_v17 = vld [vmem:[#allocation5 + $0xd8] sm:$0xff]  ;;  %s4456_s10 = scalar_lea.hbm %s4509_s5, %s2097_s30 }
  0x3d   : > { %s2039_s26 = sshll.u32 %s4609_s25, 3  ;;  %2124 = vmatprep.subr.mxu1 %v650_v6  ;;  %2236 = vmatprep.subr.mxu0 %v698_v9  ;;  %v632_v15 = vld [vmem:[#allocation5 + $0x60] sm:$0xff]  ;;  %v696_v18 = vld [vmem:[%s4507_s3 + $0x60] sm:$0xff]  ;;  %v631_v19 = vld [vmem:[#allocation5 + $0x58] sm:$0xff]  ;;  %s2037_s25 = sshll.u32 %s244_s16, 6 }
  0x3e   : > { %s2805_s7 = scalar_lea.vmem %s4504_s0, %s2039_s26  ;;  %2125 = vmatpush3.msra.mxu1 %v634_v8  ;;  %2237 = vmatpush3.msra.mxu0 %v698_v9  ;;  %v646_v20 = vld [vmem:[#allocation5 + $0xd0] sm:$0xff]  ;;  %v695_v21 = vld [vmem:[%s4507_s3 + $0x58] sm:$0xff]  ;;  %v694_v25 = vld [vmem:[%s4507_s3 + $0x50] sm:$0xff]  ;;  %s4420_s26 = scalar_lea.vmem [#allocation7], %s2037_s25 }
  0x3f   : > { %v2808_v1 = vld [vmem:[%s2805_s7 + $0x8] sm:$0xff]  ;;  %v2811_v2 = vld [vmem:[%s2805_s7] sm:$0xff]  ;;  %v2826_v11 = vld [vmem:[%s2805_s7 + $0x10] sm:$0xff]  ;;  %2126 = vmatprep.subr.mxu1 %v649_v10  ;;  %2238 = vmatprep.subr.mxu0 %v697_v14  ;;  %s1945_s6 = sshll.u32 %s4420_s26, 4  ;;  %s4464_s22 = scalar_lea.sflag [#allocation4], %s244_s16  ;;  %s4458_s6 = int_to_ptr.vmem [resolvable:$true] %s1945_s6 }
  0x40   : > { %278 = vperm.xlu1 %2434, %v2808_v1   ;;  %273 = vperm.xlu0 %2432, %v2811_v2   ;;  %v2835_v16 = vld [vmem:[%s2805_s7 + $0x18] sm:$0xff]  ;;  %v2846_v22 = vld [vmem:[%s2805_s7 + $0x20] sm:$0xff]  ;;  %v2312_v27 = vtrunc.f32 %v2808_v1  ;;  %v2855_v28 = vld [vmem:[%s2805_s7 + $0x28] sm:$0xff]  ;;  %v2310_v30 = vtrunc.f32 %v2811_v2  ;;  %v2314_v58 = vtrunc.f32 %v2826_v11  ;;  %s2593_s11 = scalar_lea.vmem %s4458_s6, 1024  ;;  %p4602_p13 = scmp.ne.s32.totalorder %s4544_s28, 0 }
  0x41   : > { %2127 = vmatpush3.msra.mxu1 %v633_v12  ;;  %2239 = vmatpush3.msra.mxu0 %v697_v14  ;;  %v630_v23 = vld [vmem:[#allocation5 + $0x50] sm:$0xff]  ;;  %v645_v24 = vld [vmem:[#allocation5 + $0xc8] sm:$0xff]  ;;  %v644_v29 = vld [vmem:[#allocation5 + $0xc0] sm:$0xff]  ;;  %v2316_v43 = vtrunc.f32 %v2835_v16  ;;  %v2320_v5 = vtrunc.f32 %v2855_v28  ;;  %p2594_p12 = scmp.ne.s32.totalorder %s4458_s6, %s2593_s11  ;;  %s2677_s12 = smov [#allocation7]  }
  0x42   : > { %2128 = vmatprep.subr.mxu1 %v648_v13  ;;  %2240 = vmatprep.subr.mxu0 %v696_v18  ;;  %v629_v26 = vld [vmem:[#allocation5 + $0x48] sm:$0xff]  ;;  %v693_v31 = vld [vmem:[%s4507_s3 + $0x48] sm:$0xff]  ;;  %v628_v32 = vld [vmem:[#allocation5 + $0x40] sm:$0xff]  ;;  %v2313_v35 = vcvt.f32.s32 %v2312_v27  ;;  %v2311_v37 = vcvt.f32.s32 %v2310_v30  ;;  %s2597_s13 = sshll.u32 %s2677_s12, 4  ;;  %s2598_s13 = int_to_ptr.vmem [resolvable:$false] %s2597_s13 }
  0x43   : > { %2129 = vmatpush3.msra.mxu1 %v632_v15  ;;  %2241 = vmatpush3.msra.mxu0 %v696_v18  ;;  %v643_v33 = vld [vmem:[#allocation5 + $0xb8] sm:$0xff]  ;;  %v692_v34 = vld [vmem:[%s4507_s3 + $0x40] sm:$0xff]  ;;  %v691_v40 = vld [vmem:[%s4507_s3 + $0x38] sm:$0xff]  ;;  %v2317_v51 = vcvt.f32.s32 %v2316_v43  ;;  %v2321_v8 = vcvt.f32.s32 %v2320_v5  ;;  %p2595_p4 = pnand %p2594_p12, %p4602_p13  ;;  %s2599_s14 = scalar_lea.vmem %s2598_s13, 2048 }
  0x44   : > { %2435 = vset.pattern.permute.xlu1 %v2668_v7  ;;  %2433 = vset.pattern.permute.xlu0 %v2668_v7  ;;  %v627_v36 = vld [vmem:[#allocation5 + $0x38] sm:$0xff]  ;;  %v642_v39 = vld [vmem:[#allocation5 + $0xb0] sm:$0xff]  ;;  %v641_v42 = vld [vmem:[#allocation5 + $0xa8] sm:$0xff]  ;;  %p2600_p8 = scmp.lt.s32.totalorder %s4458_s6, %s2598_s13  ;;  %p2601_p11 = scmp.lt.s32.totalorder %s2599_s14, %s2593_s11 }
  0x45   : > { %371 = vperm.xlu1 %2435, %v2808_v1   ;;  %367 = vperm.xlu0 %2433, %v2811_v2   ;;  %v626_v41 = vld [vmem:[#allocation5 + $0x30] sm:$0xff]  ;;  %v2873_v44 = vld [vmem:[%s2805_s7 + $0x38] sm:$0xff]  ;;  %v260_v45 = vld [vmem:[%s2805_s7 + $0x30] sm:$0xff]  ;;  %v2315_v1 = vcvt.f32.s32 %v2314_v58  ;;  %p2596_p7 = pneg %p2595_p4 }
  0x46   : > { %2130 = vmatprep.subr.mxu1 %v647_v17  ;;  %2242 = vmatprep.subr.mxu0 %v695_v21  ;;  %v690_v46 = vld [vmem:[%s4507_s3 + $0x30] sm:$0xff]  ;;  %v625_v47 = vld [vmem:[#allocation5 + $0x28] sm:$0xff]  ;;  %v689_v49 = vld [vmem:[%s4507_s3 + $0x28] sm:$0xff]  ;;  %v2322_v50 = vtrunc.f32 %v260_v45  ;;  %p2602_p0 = por %p2601_p11, %p2600_p8 }
  0x47   : > { %2131 = vmatpush3.msra.mxu1 %v631_v19  ;;  %2243 = vmatpush3.msra.mxu0 %v695_v21  ;;  %v640_v48 = vld [vmem:[#allocation5 + $0xa0] sm:$0xff]  ;;  %v639_v53 = vld [vmem:[#allocation5 + $0x98] sm:$0xff]  ;;  %v688_v54 = vld [vmem:[%s4507_s3 + $0x20] sm:$0xff]  ;;  %v312_v19 = vlaneseq }
  0x48   : > { %2132 = vmatprep.subr.mxu1 %v646_v20  ;;  %2244 = vmatprep.subr.mxu0 %v694_v25  ;;  %v624_v52 = vld [vmem:[#allocation5 + $0x20] sm:$0xff]  ;;  %v2323_v55 = vcvt.f32.s32 %v2322_v50  ;;  %v623_v56 = vld [vmem:[#allocation5 + $0x18] sm:$0xff]  ;;  %v638_v57 = vld [vmem:[#allocation5 + $0x90] sm:$0xff]  ;;  %p2603_p1 = pnand %p2602_p0, %p2596_p7 }
  0x49   : > { %2436 = vset.pattern.permute.xlu1 %v2667_v0  ;;  %375 = vperm.xlu0 %2433, %v2826_v11   ;;  %v687_v59 = vld [vmem:[%s4507_s3 + $0x18] sm:$0xff]  ;;  %v622_v60 = vld [vmem:[#allocation5 + $0x10] sm:$0xff]  ;;  %v686_v62 = vld [vmem:[%s4507_s3 + $0x10] sm:$0xff] }
  0x4a   : > { %283 = vperm.xlu1 %2436, %v2826_v11   ;;  %2133 = vmatpush3.msra.mxu1 %v630_v23  ;;  %v637_v61 = vld [vmem:[#allocation5 + $0x88] sm:$0xff]  ;;  %v636_v2 = vld [vmem:[#allocation5 + $0x80] sm:$0xff]  ;;  %v685_v3 = vld [vmem:[%s4507_s3 + $0x8] sm:$0xff] }
  0x4b   : > { %2134 = vmatprep.subr.mxu1 %v645_v24  ;;  %2245 = vmatpush3.msra.mxu0 %v694_v25  ;;  %v621_v63 = vld [vmem:[#allocation5 + $0x8] sm:$0xff]  ;;  %v620_v4 = vld [vmem:[#allocation5] sm:$0xff]  ;;  %v684_v10 = vld [vmem:[%s4507_s3] sm:$0xff] }
  0x4c   : > { %2135 = vmatpush3.msra.mxu1 %v629_v26  ;;  %2246 = vmatprep.subr.mxu0 %v693_v31  ;;  %v683_v11 = vld [vmem:[#allocation5 + $0x1f8] sm:$0xff] }
  0x4d   : > { %379 = vperm.xlu0 %2433, %v2835_v16   ;;  %2136 = vmatprep.subr.mxu1 %v644_v29  ;;  %v365_v23 = vld [vmem:[#allocation2 + $0x1] ss:$4 sm:$0xf]  ;;  %v270_v26 = vld [vmem:[#allocation2] ss:$4 sm:$0xf] }
  0x4e   : > { %288 = vperm.xlu1 %2436, %v2835_v16   ;;  %2137 = vmatpush3.msra.mxu1 %v628_v32 }
  0x4f   : > { %2247 = vmatpush3.msra.mxu0 %v693_v31  ;;  %2138 = vmatprep.subr.mxu1 %v643_v33  ;;  %v484_v33 = vld [vmem:[#allocation2 + $0x2] ss:$4 sm:$0xf] }
  0x50   : > { %2248 = vmatprep.subr.mxu0 %v692_v34  ;;  %2139 = vmatpush3.msra.mxu1 %v627_v36 }
  0x51   : > { %383 = vperm.xlu0 %2433, %v2846_v22   ;;  %2249 = vmatpush3.msra.mxu0 %v692_v34 }
  0x52   : > { %293 = vperm.xlu1 %2436, %v2846_v22   ;;  %2140 = vmatprep.subr.mxu1 %v642_v39  ;;  %v2947_v39 = vld [vmem:[%s4508_s4] ss:$0 sm:$0xff] }
  0x53   : > { %2250 = vmatprep.subr.mxu0 %v691_v40  ;;  %2141 = vmatpush3.msra.mxu1 %v626_v41  ;;  %4554 = vst [vmem:[#allocation12_spill] sm:$0xff] %v2947_v39 }
  0x54   : > { %2251 = vmatpush3.msra.mxu0 %v691_v40  ;;  %2142 = vmatprep.subr.mxu1 %v641_v42 }
  0x55   : > { %387 = vperm.xlu0 %2433, %v2855_v28   ;;  %2252 = vmatprep.subr.mxu0 %v690_v46 }
  0x56   : > { %298 = vperm.xlu1 %2436, %v2855_v28   ;;  %2143 = vmatpush3.msra.mxu1 %v625_v47 }
  0x57   : > { %2253 = vmatpush3.msra.mxu0 %v690_v46  ;;  %2144 = vmatprep.subr.mxu1 %v640_v48 }
  0x58   : > { %2254 = vmatprep.subr.mxu0 %v689_v49  ;;  %2145 = vmatpush3.msra.mxu1 %v624_v52 }
  0x59   : > { %2438 = vset.pattern.permute.xlu0 %v2669_v38  ;;  %2255 = vmatpush3.msra.mxu0 %v689_v49 }
  0x5a   : > { %2437 = vset.pattern.permute.xlu1 %v2669_v38  ;;  %576 = vperm.xlu0 %2438, %v2313_v35  }
  0x5b   : > { %573 = vperm.xlu1 %2437, %v2311_v37   ;;  %2146 = vmatprep.subr.mxu1 %v639_v53 }
  0x5c   : > { %2256 = vmatprep.subr.mxu0 %v688_v54  ;;  %2147 = vmatpush3.msra.mxu1 %v623_v56 }
  0x5d   : > { %2257 = vmatpush3.msra.mxu0 %v688_v54  ;;  %2148 = vmatprep.subr.mxu1 %v638_v57 }
  0x5e   : > { %2441 = vset.pattern.permute.xlu0 %v2667_v0  ;;  %2258 = vmatprep.subr.mxu0 %v687_v59 }
  0x5f   : > { %308 = vperm.xlu0 %2441, %v2873_v44   ;;  %2439 = vset.pattern.permute.xlu1 %v2667_v0  ;;  %v2318_v0 = vtrunc.f32 %v2846_v22  ;;  %v313_v22 = vshrl.u32 %v312_v19, 7 }
  0x60   : > { %303 = vperm.xlu1 %2439, %v260_v45   ;;  %2149 = vmatpush3.msra.mxu1 %v622_v60 }
  0x61   : > { %2259 = vmatpush3.msra.mxu0 %v687_v59  ;;  %2150 = vmatprep.subr.mxu1 %v637_v61  ;;  %v2319_v6 = vcvt.f32.s32 %v2318_v0  ;;  %v314_v24 = vsub.s32 0, %v313_v22  ;;  %v318_v27 = vsub.s32 1, %v313_v22  ;;  %v322_v28 = vsub.s32 2, %v313_v22 }
  0x62   : > { %2260 = vmatprep.subr.mxu0 %v686_v62  ;;  %2151 = vmatpush3.msra.mxu1 %v621_v63  ;;  %v326_v29 = vsub.s32 3, %v313_v22 }
  0x63   : > { %2443 = vset.pattern.permute.xlu0 %v2669_v38  ;;  %2261 = vmatpush3.msra.mxu0 %v686_v62  ;;  %v2930_v31 = vrot.slane %v365_v23, %v314_v24  ;;  %v2932_v32 = vrot.slane %v365_v23, %v318_v27  ;;  %v2934_v34 = vrot.slane %v270_v26, %v314_v24 }
  0x64   : > { %2440 = vset.pattern.permute.xlu1 %v2668_v7  ;;  %582 = vperm.xlu0 %2443, %v2317_v51   ;;  %v2324_v7 = vtrunc.f32 %v2873_v44  ;;  %v2936_v35 = vrot.slane %v270_v26, %v318_v27  ;;  %v2938_v36 = vrot.slane %v270_v26, %v322_v28  ;;  %v2940_v37 = vrot.slane %v270_v26, %v326_v29 }
  0x65   : > { %391 = vperm.xlu1 %2440, %v260_v45   ;;  %2152 = vmatprep.subr.mxu1 %v636_v2  ;;  %v2951_v41 = vrot.slane %v365_v23, %v326_v29  ;;  %v2953_v42 = vrot.slane %v484_v33, %v314_v24  ;;  %v2957_v45 = vrot.slane %v484_v33, %v318_v27  ;;  %v2969_v51 = vand.u32 127, %v312_v19  ;;  %v3014_v19 = vld [vmem:[#allocation5 + $0x178] sm:$0xff] }
  0x66   : > { %2262 = vmatprep.subr.mxu0 %v685_v3  ;;  %2153 = vmatpush3.msra.mxu1 %v620_v4  ;;  %v2325_v9 = vcvt.f32.s32 %v2324_v7  ;;  %v2959_v46 = vrot.slane %v484_v33, %v322_v28  ;;  %v2967_v50 = vrot.slane %v484_v33, %v326_v29  ;;  %v4513_v27 = vmov 1.0  }
  0x67   : > { %2263 = vmatpush3.msra.mxu0 %v685_v3  ;;  %2278 = vmatprep.subr.mxu1 %v683_v11 }
  0x68   : > { %591 = vperm.xlu0 %2443, %v2323_v55   ;;  %2264 = vmatprep.subr.mxu0 %v684_v10  ;;  %v2980_v55 = vld [vmem:[%s4508_s4 + $0x1] ss:$0 sm:$0xff] }
  0x69   : > { %395 = vperm.xlu1 %2440, %v2873_v44   ;;  %2265 = vmatpush3.msra.mxu0 %v684_v10 }
  0x6a   : > { %2178 = vmatprep.subr.mxu0 %v683_v11 }
  0x6d   : > { %2442 = vset.pattern.permute.xlu1 %v2669_v38  ;;  %v2942_v38 = vrot.slane %v365_v23, %v322_v28  ;;  %v3023_v28 = vld [vmem:[#allocation5 + $0x1f0] sm:$0xff] }
  0x6e   : > { %579 = vperm.xlu1 %2442, %v2315_v1  }
  0x72   : > { %585 = vperm.xlu1 %2442, %v2319_v6  }
  0x76   : > { %588 = vperm.xlu1 %2442, %v2321_v8  }
  0x7a   : > { %594 = vperm.xlu1 %2442, %v2325_v9  }
  0xbb   : > { %v2908_v12 = vpop.permute.xlu1 %278  ;;  %v2912_v14 = vpop.permute.xlu0 %273 }
  0xbc   : > { %v332_v40 = vmul.f32 %v2934_v34, %v2912_v14  ;;  %v333_v49 = vmul.f32 %v2936_v35, %v2912_v14  ;;  %v1034_v52 = vmul.f32 %v2947_v39, %v2908_v12  ;;  %v1033_v53 = vmul.f32 %v2947_v39, %v2912_v14 }
  0xbd   : > { %v337_v59 = vmul.f32 %v2936_v35, %v2908_v12  ;;  %v336_v62 = vmul.f32 %v2934_v34, %v2908_v12  ;;  %v338_v63 = vmul.f32 %v2938_v36, %v2908_v12  ;;  %v339_v22 = vmul.f32 %v2940_v37, %v2908_v12 }
  0xbe   : > { %v2997_v2 = vadd.f32 %v2980_v55, %v1034_v52  ;;  %v3000_v3 = vadd.f32 %v2980_v55, %v1033_v53  ;;  %v334_v23 = vmul.f32 %v2938_v36, %v2912_v14  ;;  %v335_v33 = vmul.f32 %v2940_v37, %v2912_v14  ;;  %v3039_v14 = vld [vmem:[#allocation5 + $0x1e8] sm:$0xff] }
  0xc0   : > { %v2910_v13 = vpop.permute.xlu1 %371  ;;  %v2916_v16 = vpop.permute.xlu0 %367  ;;  %4555 = vst [vmem:[#allocation13_spill] sm:$0xff] %v2997_v2  ;;  %4556 = vst [vmem:[#allocation14_spill] sm:$0xff] %v3000_v3  ;;  %v1162_v29 = vand.u32 2139095040, %v2997_v2  ;;  %v3115_v2 = vld [vmem:[#allocation5 + $0x1c0] sm:$0xff] }
  0xc1   : > { %v419_v43 = vmul.f32 %v2930_v31, %v2916_v16  ;;  %v420_v47 = vmul.f32 %v2932_v32, %v2916_v16  ;;  %v424_v54 = vmul.f32 %v2932_v32, %v2910_v13  ;;  %v423_v0 = vmul.f32 %v2930_v31, %v2910_v13 }
  0xc2   : > { %v425_v24 = vmul.f32 %v2942_v38, %v2910_v13 }
  0xc3   : > { %v451_v56 = vadd.f32 %v419_v43, %v332_v40  ;;  %v452_v60 = vadd.f32 %v420_v47, %v333_v49  ;;  %v456_v4 = vadd.f32 %v424_v54, %v337_v59  ;;  %v455_v26 = vadd.f32 %v423_v0, %v336_v62  ;;  %v3033_v43 = vld [vmem:[#allocation5 + $0x170] sm:$0xff] }
  0xc4   : > { %v2920_v18 = vpop.permute.xlu0 %375  ;;  %v1058_v40 = vand.u32 2139095040, %v3000_v3  ;;  %v421_v0 = vmul.f32 %v2942_v38, %v2916_v16 }
  0xc5   : > { %v2914_v15 = vpop.permute.xlu1 %283  ;;  %v428_v57 = vmul.f32 %v2932_v32, %v2920_v18  ;;  %v427_v5 = vmul.f32 %v2930_v31, %v2920_v18  ;;  %v506_v6 = vadd.f32 %v2953_v42, %v451_v56  ;;  %v507_v11 = vadd.f32 %v2957_v45, %v452_v60 }
  0xc6   : > { %4553 = vst [vmem:[#allocation11_spill] sm:$0xff] %v2914_v15  ;;  %v341_v58 = vmul.f32 %v2936_v35, %v2914_v15  ;;  %v340_v7 = vmul.f32 %v2934_v34, %v2914_v15  ;;  %v511_v12 = vadd.f32 %v2957_v45, %v456_v4  ;;  %v1059_v62 = vshrl.u32 %v1058_v40, 23  ;;  %v3063_v4 = vld [vmem:[#allocation5 + $0x160] sm:$0xff] }
  0xc7   : > { %2444 = vtanh.f32 %v506_v6 }
  0xc8   : > { %v2924_v21 = vpop.permute.xlu0 %379  ;;  %v460_v8 = vadd.f32 %v428_v57, %v341_v58  ;;  %v459_v47 = vadd.f32 %v427_v5, %v340_v7  ;;  %2446 = vtanh.f32 %v507_v11  ;;  %v457_v57 = vadd.f32 %v425_v24, %v338_v63  ;;  %v3077_v24 = vld [vmem:[#allocation5 + $0x158] sm:$0xff] }
  0xc9   : > { %v2918_v17 = vpop.permute.xlu1 %288  ;;  %v432_v9 = vmul.f32 %v2932_v32, %v2924_v21  ;;  %v510_v58 = vadd.f32 %v2953_v42, %v455_v26  ;;  %v431_v59 = vmul.f32 %v2930_v31, %v2924_v21  ;;  %2448 = vtanh.f32 %v511_v12  ;;  %v3086_v12 = vld [vmem:[#allocation5 + $0x1d0] sm:$0xff] }
  0xca   : > { %v345_v10 = vmul.f32 %v2936_v35, %v2918_v17  ;;  %v515_v49 = vadd.f32 %v2957_v45, %v460_v8  ;;  %v344_v60 = vmul.f32 %v2934_v34, %v2918_v17  ;;  %v422_v63 = vmul.f32 %v2951_v41, %v2916_v16  ;;  %v3069_v8 = vld [vmem:[#allocation5 + $0x1d8] sm:$0xff] }
  0xcb   : > { %v3065_v5 = vshrl.u32 %v1162_v29, 23  ;;  %v514_v7 = vadd.f32 %v2953_v42, %v459_v47  ;;  %v512_v47 = vadd.f32 %v2959_v46, %v457_v57 }
  0xcc   : > { %v2928_v30 = vpop.permute.xlu0 %383  ;;  %v464_v53 = vadd.f32 %v432_v9, %v345_v10  ;;  %2450 = vtanh.f32 %v515_v49  ;;  %v453_v49 = vadd.f32 %v421_v0, %v334_v23  ;;  %v3101_v23 = vld [vmem:[#allocation5 + $0x1c8] sm:$0xff] }
  0xcd   : > { %v2922_v20 = vpop.permute.xlu1 %293  ;;  %v436_v54 = vmul.f32 %v2932_v32, %v2928_v30  ;;  %4557 = vst [vmem:[#allocation15_spill] sm:$0xff] %v3065_v5  ;;  %2452 = vtanh.f32 %v510_v58  ;;  %v435_v26 = vmul.f32 %v2930_v31, %v2928_v30  ;;  %v430_v58 = vmul.f32 %v2951_v41, %v2920_v18 }
  0xce   : > { %v349_v56 = vmul.f32 %v2936_v35, %v2922_v20  ;;  %v519_v9 = vadd.f32 %v2957_v45, %v464_v53  ;;  %v348_v29 = vmul.f32 %v2934_v34, %v2922_v20  ;;  %v454_v53 = vadd.f32 %v422_v63, %v335_v33 }
  0xcf   : > { %2454 = vtanh.f32 %v514_v7  ;;  %v343_v33 = vmul.f32 %v2940_v37, %v2914_v15 }
  0xd0   : > { %v2963_v48 = vpop.permute.xlu0 %387  ;;  %v468_v10 = vadd.f32 %v436_v54, %v349_v56  ;;  %v3090_v54 = vld [vmem:[#allocation5 + $0x150] sm:$0xff]  ;;  %v429_v56 = vmul.f32 %v2942_v38, %v2920_v18  ;;  %2456 = vtanh.f32 %v519_v9  ;;  %v3107_v18 = vld [vmem:[#allocation5 + $0x148] sm:$0xff]  ;;  %v467_v63 = vadd.f32 %v435_v26, %v348_v29 }
  0xd1   : > { %v2926_v25 = vpop.permute.xlu1 %298  ;;  %v440_v16 = vmul.f32 %v2932_v32, %v2963_v48  ;;  %4558 = vst [vmem:[#allocation16_spill] sm:$0xff] %v3107_v18  ;;  %v439_v7 = vmul.f32 %v2930_v31, %v2963_v48  ;;  %2458 = vtanh.f32 %v512_v47  ;;  %v1037_v29 = vmul.f32 %v2947_v39, %v2922_v20 }
  0xd2   : > { %v353_v11 = vmul.f32 %v2936_v35, %v2926_v25  ;;  %v523_v57 = vadd.f32 %v2957_v45, %v468_v10  ;;  %v462_v5 = vadd.f32 %v430_v58, %v343_v33 }
  0xd4   : > { %2460 = vtanh.f32 %v523_v57  ;;  %v3150_v57 = vadd.f32 %v2980_v55, %v1037_v29 }
  0xd5   : > { %v577_v61 = vpop.permute.xlu0 %576 }
  0xd6   : > { %v574_v44 = vpop.permute.xlu1 %573  ;;  %vm597_vm0 = vcmp.eq.s32.totalorder %v2969_v51, %v577_v61  ;;  %v3056_v61 = vld [vmem:[#allocation5 + $0x1e0] sm:$0xff] }
  0xd7   : > { %vm596_vm1 = vcmp.eq.s32.totalorder %v2969_v51, %v574_v44  ;;  %v426_v44 = vmul.f32 %v2951_v41, %v2910_v13  ;;  %v3048_v13 = vld [vmem:[#allocation5 + $0x168] sm:$0xff] }
  0xd8   : > { %2266 = vmatprep.mubr.msk.f32.mxu0 %vm596_vm1, %v4513_v27 }
  0xd9   : > { %2267 = vmatmul.mubr.msk.f32.vlgmr.msra.gmra.mxu0 %vm597_vm0, %v4513_v27  ;;  %v458_v6 = vadd.f32 %v426_v44, %v339_v22  ;;  %v463_v22 = vadd.f32 %v431_v59, %v344_v60  ;;  %v2059_v44 = vadd.s32 4294967169, %v1059_v62  ;;  %v342_v59 = vmul.f32 %v2938_v36, %v2914_v15  ;;  %v2445_v15 = vpop.eup %2444 }
  0xda   : > { %2179 = vmatpush3.msra.mxu0 %v3014_v19  ;;  %v3098_v60 = vpop.permute.xlu0 %308  ;;  %v472_v62 = vadd.f32 %v440_v16, %v353_v11  ;;  %v352_v27 = vmul.f32 %v2934_v34, %v2926_v25  ;;  %v3119_v16 = vadd.f32 %v2959_v46, %v453_v49  ;;  %v3122_v11 = vld [vmem:[#allocation5 + $0x140] sm:$0xff]  ;;  %v3132_v49 = vld [vmem:[#allocation5 + $0x1b8] sm:$0xff] }
  0xdb   : > { %v2994_v1 = vpop.permute.xlu1 %303  ;;  %2180 = vmatprep.subr.mxu0 %v3023_v28  ;;  %v518_v0 = vadd.f32 %v2953_v42, %v463_v22  ;;  %v1065_v9 = vadd.s32 1, %v2059_v44  ;;  %v513_v10 = vadd.f32 %v2967_v50, %v458_v6  ;;  %v3125_v22 = vadd.f32 %v2967_v50, %v454_v53 }
  0xdc   : > { %2181 = vmatpush3.msra.mxu0 %v3033_v43  ;;  %v461_v26 = vadd.f32 %v429_v56, %v342_v59  ;;  %v527_v3 = vadd.f32 %v2957_v45, %v472_v62  ;;  %v2447_v56 = vpop.eup %2446  ;;  %v522_v59 = vadd.f32 %v2953_v42, %v467_v63  ;;  %v471_v39 = vadd.f32 %v439_v7, %v352_v27  ;;  %v3153_v63 = vld [vmem:[#allocation5 + $0x138] sm:$0xff] }
  0xdd   : > { %2182 = vmatprep.subr.mxu0 %v3039_v14  ;;  %2462 = vtanh.f32 %v518_v0  ;;  %vm1066_vm2 = vcmp.gt.s32.totalorder %v1065_v9, 0  ;;  %869 = vmatprep.mubr.f32.mxu1 %v2447_v56  ;;  %v356_v58 = vmul.f32 %v2934_v34, %v2994_v1  ;;  %v2449_v33 = vpop.eup %2448  ;;  %v433_v27 = vmul.f32 %v2942_v38, %v2924_v21 }
  0xde   : > { %2183 = vmatpush3.msra.mxu0 %v3048_v13  ;;  %2464 = vtanh.f32 %v513_v10  ;;  %870 = vmatmul.mubr.f32.vlgmr.msra.gmra.mxu1 %v2445_v15  ;;  %v4559_v0 = vmov 1.0   ;;  %v2451_v7 = vpop.eup %2450  ;;  %v346_v56 = vmul.f32 %v2938_v36, %v2918_v17  ;;  %v526_v15 = vadd.f32 %v2953_v42, %v471_v39 }
  0xdf   : > { %2184 = vmatprep.subr.mxu0 %v3056_v61  ;;  %v583_v47 = vpop.permute.xlu0 %582  ;;  %2466 = vtanh.f32 %v527_v3  ;;  %874 = vmatprep.mubr.f32.mxu1 %v2449_v33  ;;  %v1067_v3 = vsel %vm1066_vm2, %v1065_v9, 0  ;;  %v360_v39 = vmul.f32 %v2934_v34, %v3098_v60  ;;  %v347_v9 = vmul.f32 %v2940_v37, %v2918_v17 }
  0xe0   : > { %v3041_v52 = vpop.permute.xlu1 %391  ;;  %2185 = vmatpush3.msra.mxu0 %v3063_v4  ;;  %vm599_vm4 = vcmp.eq.s32.totalorder %v2969_v51, %v583_v47  ;;  %2294 = vmatpush3.msra.mxu1 %v3014_v19  ;;  %2468 = vtanh.f32 %v522_v59  ;;  %v516_v19 = vadd.f32 %v2959_v46, %v461_v26  ;;  %v1474_v26 = vand.u32 2139095040, %v3150_v57 }
  0xe1   : > { %2186 = vmatprep.subr.mxu0 %v3069_v8  ;;  %v444_v44 = vmul.f32 %v2932_v32, %v3041_v52  ;;  %v443_v53 = vmul.f32 %v2930_v31, %v3041_v52  ;;  %2279 = vmatprep.subr.mxu1 %v3023_v28  ;;  %v3180_v28 = vadd.f32 %v2967_v50, %v462_v5  ;;  %v3189_v47 = vshrl.u32 %v1067_v3, 5 }
  0xe2   : > { %2187 = vmatpush3.msra.mxu0 %v3077_v24  ;;  %2295 = vmatpush3.msra.mxu1 %v3033_v43  ;;  %v437_v5 = vmul.f32 %v2942_v38, %v2928_v30  ;;  %v438_v33 = vmul.f32 %v2951_v41, %v2928_v30  ;;  %2470 = vtanh.f32 %v526_v15  ;;  %v3213_v15 = vld [vmem:[#allocation5 + $0x1a8] sm:$0xff] }
  0xe3   : > { %2188 = vmatprep.subr.mxu0 %v3086_v12  ;;  %v475_v10 = vadd.f32 %v443_v53, %v356_v58  ;;  %2280 = vmatprep.subr.mxu1 %v3039_v14  ;;  %v465_v53 = vadd.f32 %v433_v27, %v346_v56  ;;  %v350_v14 = vmul.f32 %v2938_v36, %v2922_v20  ;;  %v3201_v27 = vand.u32 31, %v1067_v3 }
  0xe4   : > { %v3084_v40 = vpop.permute.xlu1 %395  ;;  %2189 = vmatpush3.msra.mxu0 %v3090_v54  ;;  %2296 = vmatpush3.msra.mxu1 %v3048_v13  ;;  %vm1090_vm10 = vcmp.lt.s32.totalorder %v3189_v47, 4  ;;  %vm1087_vm11 = vcmp.lt.s32.totalorder %v3189_v47, 1  ;;  %vm1089_vm12 = vcmp.lt.s32.totalorder %v3189_v47, 3  ;;  %vm1088_vm13 = vcmp.lt.s32.totalorder %v3189_v47, 2 }
  0xe5   : > { %2190 = vmatprep.subr.mxu0 %v3101_v23  ;;  %v448_v29 = vmul.f32 %v2932_v32, %v3084_v40  ;;  %v3177_v32 = vld [vmem:[#allocation5 + $0x1b0] sm:$0xff]  ;;  %v530_v59 = vadd.f32 %v2953_v42, %v475_v10  ;;  %2281 = vmatprep.subr.mxu1 %v3056_v61  ;;  %v1475_v10 = vshrl.u32 %v1474_v26, 23  ;;  %v441_v61 = vmul.f32 %v2942_v38, %v2963_v48 }
  0xe6   : > { %2191 = vmatpush3.msra.mxu0 %v3107_v18  ;;  %v357_v18 = vmul.f32 %v2936_v35, %v2994_v1  ;;  %2297 = vmatpush3.msra.mxu1 %v3063_v4  ;;  %v354_v4 = vmul.f32 %v2938_v36, %v2926_v25  ;;  %v3231_v3 = vsub.s32 32, %v3201_v27 }
  0xe7   : > { %2192 = vmatprep.subr.mxu0 %v3115_v2  ;;  %2282 = vmatprep.subr.mxu1 %v3069_v8  ;;  %v446_v8 = vmul.f32 %v2951_v41, %v3041_v52 }
  0xe8   : > { %2193 = vmatpush3.msra.mxu0 %v3122_v11  ;;  %v476_v62 = vadd.f32 %v444_v44, %v357_v18  ;;  %v361_v18 = vmul.f32 %v2936_v35, %v3098_v60  ;;  %v447_v35 = vmul.f32 %v2930_v31, %v3084_v40  ;;  %v3187_v44 = vld [vmem:[#allocation5 + $0x130] sm:$0xff]  ;;  %2298 = vmatpush3.msra.mxu1 %v3077_v24 }
  0xe9   : > { %v580_v6 = vpop.permute.xlu1 %579  ;;  %2194 = vmatprep.subr.mxu0 %v3132_v49  ;;  %2283 = vmatprep.subr.mxu1 %v3086_v12  ;;  %v520_v12 = vadd.f32 %v2959_v46, %v465_v53 }
  0xea   : > { %vm598_vm3 = vcmp.eq.s32.totalorder %v2969_v51, %v580_v6  ;;  %v434_v6 = vmul.f32 %v2951_v41, %v2924_v21  ;;  %v2453_v21 = vpop.eup %2452  ;;  %2195 = vmatpush3.msra.mxu0 %v3153_v63  ;;  %v531_v34 = vadd.f32 %v2957_v45, %v476_v62  ;;  %v480_v62 = vadd.f32 %v448_v29, %v361_v18 }
  0xeb   : > { %2269 = vmatprep.mubr.msk.f32.mxu0 %vm598_vm3, %v4559_v0  ;;  %875 = vmatmul.mubr.f32.gmra.mxu1 %v2453_v21  ;;  %v2455_v31 = vpop.eup %2454  ;;  %v479_v13 = vadd.f32 %v447_v35, %v360_v39  ;;  %v355_v18 = vmul.f32 %v2940_v37, %v2926_v25  ;;  %v469_v29 = vadd.f32 %v437_v5, %v350_v14  ;;  %v2075_v39 = vadd.s32 4294967169, %v1475_v10  ;;  %v592_v14 = vpop.permute.xlu0 %591 }
  0xec   : > { %2270 = vmatmul.mubr.msk.f32.gmra.mxu0 %vm599_vm4, %v4559_v0  ;;  %879 = vmatprep.mubr.f32.mxu1 %v2451_v7  ;;  %v2457_v58 = vpop.eup %2456  ;;  %v351_v7 = vmul.f32 %v2940_v37, %v2922_v20  ;;  %v466_v56 = vadd.f32 %v434_v6, %v347_v9  ;;  %2472 = vtanh.f32 %v531_v34  ;;  %v442_v20 = vmul.f32 %v2951_v41, %v2963_v48 }
  0xed   : > { %v586_v43 = vpop.permute.xlu1 %585  ;;  %2196 = vmatprep.subr.mxu0 %v3177_v32  ;;  %v3208_v30 = vpop.eup %2458  ;;  %2474 = vtanh.f32 %v530_v59  ;;  %v535_v21 = vadd.f32 %v2957_v45, %v480_v62  ;;  %2299 = vmatpush3.msra.mxu1 %v3090_v54  ;;  %v3237_v45 = vld [vmem:[#allocation5 + $0x128] sm:$0xff]  ;;  %v359_v35 = vmul.f32 %v2940_v37, %v2994_v1  ;;  %v473_v54 = vadd.f32 %v441_v61, %v354_v4 }
  0xee   : > { %vm600_vm5 = vcmp.eq.s32.totalorder %v2969_v51, %v586_v43  ;;  %2197 = vmatpush3.msra.mxu0 %v3187_v44  ;;  %v2461_v6 = vpop.eup %2460  ;;  %2476 = vtanh.f32 %v3119_v16  ;;  %v470_v24 = vadd.f32 %v438_v33, %v351_v7  ;;  %v534_v16 = vadd.f32 %v2953_v42, %v479_v13  ;;  %2284 = vmatprep.subr.mxu1 %v3101_v23  ;;  %v671_v13 = vld [vmem:[#allocation5 + $0x198] sm:$0xff] }
  0xef   : > { %880 = vmatmul.mubr.f32.gmra.mxu1 %v2455_v31  ;;  %2272 = vmatprep.mubr.msk.f32.mxu0 %vm600_vm5, %v4559_v0  ;;  %v2463_v48 = vpop.eup %2462  ;;  %2478 = vtanh.f32 %v3125_v22  ;;  %v3243_v22 = vld [vmem:[#allocation5 + $0x1a0] sm:$0xff]  ;;  %v521_v42 = vadd.f32 %v2967_v50, %v466_v56  ;;  %v474_v26 = vadd.f32 %v442_v20, %v355_v18  ;;  %v524_v31 = vadd.f32 %v2959_v46, %v469_v29 }
  0xf0   : > { %884 = vmatprep.mubr.f32.mxu1 %v2457_v58  ;;  %2198 = vmatprep.subr.mxu0 %v3213_v15  ;;  %2480 = vtanh.f32 %v516_v19  ;;  %v3245_v9 = vpop.eup %2464  ;;  %v4560_v19 = vld [vmem:[#allocation16_spill] sm:$0xff]  ;;  %v445_v23 = vmul.f32 %v2942_v38, %v3041_v52  ;;  %v478_v53 = vadd.f32 %v446_v8, %v359_v35  ;;  %v525_v5 = vadd.f32 %v2967_v50, %v470_v24  ;;  %v656_v52 = vld [vmem:[#allocation5 + $0x120] sm:$0xff]  ;;  %v670_v24 = vld [vmem:[#allocation5 + $0x190] sm:$0xff] }
  0xf1   : > { %2482 = vtanh.f32 %v3180_v28  ;;  %2300 = vmatpush3.msra.mxu1 %v4560_v19  ;;  %v589_v34 = vpop.permute.xlu1 %588  ;;  %v2467_v43 = vpop.eup %2466  ;;  %2199 = vmatpush3.msra.mxu0 %v3237_v45  ;;  %v363_v59 = vmul.f32 %v2940_v37, %v3098_v60  ;;  %v450_v58 = vmul.f32 %v2951_v41, %v3084_v40  ;;  %v1481_v33 = vadd.s32 1, %v2075_v39 }
  0xf2   : > { %2484 = vtanh.f32 %v535_v21  ;;  %2285 = vmatprep.subr.mxu1 %v3115_v2  ;;  %v2469_v28 = vpop.eup %2468  ;;  %2200 = vmatprep.subr.mxu0 %v3243_v22  ;;  %v358_v2 = vmul.f32 %v2938_v36, %v2994_v1  ;;  %vm601_vm6 = vcmp.eq.s32.totalorder %v2969_v51, %v589_v34  ;;  %v528_v37 = vadd.f32 %v2959_v46, %v473_v54 }
  0xf3   : > { %885 = vmatmul.mubr.f32.gmra.mxu1 %v2463_v48  ;;  %2486 = vtanh.f32 %v534_v16  ;;  %v529_v41 = vadd.f32 %v2967_v50, %v474_v26  ;;  %v533_v7 = vadd.f32 %v2967_v50, %v478_v53  ;;  %2201 = vmatpush3.msra.mxu0 %v656_v52  ;;  %v2471_v56 = vpop.eup %2470  ;;  %v482_v10 = vadd.f32 %v450_v58, %v363_v59  ;;  %v4561_v16 = vld [vmem:[#allocation14_spill] sm:$0xff]  ;;  %v654_v26 = vld [vmem:[#allocation5 + $0x110] sm:$0xff]  ;;  %v669_v59 = vld [vmem:[#allocation5 + $0x188] sm:$0xff] }
  0xf4   : > { %889 = vmatprep.mubr.f32.mxu1 %v2461_v6  ;;  %2301 = vmatpush3.msra.mxu1 %v3122_v11  ;;  %2488 = vtanh.f32 %v520_v12  ;;  %v3270_v11 = vmul.f32 %v2938_v36, %v3098_v60  ;;  %v477_v62 = vadd.f32 %v445_v23, %v358_v2  ;;  %v4528_v36 = vmov 2102212464   ;;  %v4562_v23 = vld [vmem:[#allocation15_spill] sm:$0xff] }
  0xf5   : > { %2286 = vmatprep.subr.mxu1 %v3132_v49  ;;  %2490 = vtanh.f32 %v521_v42  ;;  %v449_v49 = vmul.f32 %v2942_v38, %v3084_v40  ;;  %2273 = vmatmul.mubr.msk.f32.gmra.mxu0 %vm601_vm6, %v4559_v0  ;;  %v2672_v61 = vmov 920167782   ;;  %vm1482_vm7 = vcmp.gt.s32.totalorder %v1481_v33, 0  ;;  %v655_v40 = vld [vmem:[#allocation5 + $0x118] sm:$0xff]  ;;  %v595_v18 = vpop.permute.xlu1 %594 }
  0xf6   : > { %2302 = vmatpush3.msra.mxu1 %v3153_v63  ;;  %2492 = vtanh.f32 %v524_v31  ;;  %v1081_v63 = vshll.u32 %v4528_v36, %v3201_v27  ;;  %v1082_v38 = vshrl.u32 %v2672_v61, %v3231_v3  ;;  %vm602_vm8 = vcmp.eq.s32.totalorder %v2969_v51, %v592_v14  ;;  %2202 = vmatprep.subr.mxu0 %v671_v13 }
  0xf7   : > { %890 = vmatmul.mubr.f32.gmra.mxu1 %v2469_v28  ;;  %2287 = vmatprep.subr.mxu1 %v3177_v32  ;;  %2494 = vtanh.f32 %v525_v5  ;;  %v3289_v32 = vshll.u32 %v2672_v61, %v3201_v27  ;;  %v4537_v6 = vmov 683565275   ;;  %v4534_v29 = vmov 2475754826  }
  0xf8   : > { %894 = vmatprep.mubr.f32.mxu1 %v2467_v43  ;;  %2303 = vmatpush3.msra.mxu1 %v3187_v44  ;;  %v4530_v44 = vmov 1326507024   ;;  %2496 = vtanh.f32 %v529_v41  ;;  %v1073_v8 = vshrl.u32 %v4534_v29, %v3231_v3  ;;  %v1075_v21 = vshll.u32 %v4534_v29, %v3201_v27 }
  0xf9   : > { %2288 = vmatprep.subr.mxu1 %v3213_v15  ;;  %v3293_v20 = vshrl.u32 %v4530_v44, %v3231_v3  ;;  %v2473_v4 = vpop.eup %2472  ;;  %v1072_v15 = vshll.u32 %v4537_v6, %v3201_v27  ;;  %2275 = vmatprep.mubr.msk.f32.mxu0 %vm602_vm8, %v4559_v0  ;;  %v4532_v12 = vmov 2131351028   ;;  %v1079_v42 = vshrl.u32 %v4528_v36, %v3231_v3 }
  0xfa   : > { %2304 = vmatpush3.msra.mxu1 %v3237_v45  ;;  %v2475_v48 = vpop.eup %2474  ;;  %v4527_v45 = vand.u32 2147483647, %v4561_v16  ;;  %v1076_v39 = vshrl.u32 %v4532_v12, %v3231_v3  ;;  %v1078_v35 = vshll.u32 %v4532_v12, %v3201_v27  ;;  %2498 = vtanh.f32 %v528_v37  ;;  %2203 = vmatpush3.msra.mxu0 %v655_v40 }
  0xfb   : > { %895 = vmatmul.mubr.f32.gmra.mxu1 %v2471_v56  ;;  %2289 = vmatprep.subr.mxu1 %v3243_v22  ;;  %v3313_v54 = vpop.eup %2476  ;;  %v3316_v22 = vsel %vm1482_vm7, %v1481_v33, 0  ;;  %v1083_v19 = vor.u32 %v1082_v38, %v1081_v63  ;;  %v532_v43 = vadd.f32 %v2959_v46, %v477_v62  ;;  %vm603_vm9 = vcmp.eq.s32.totalorder %v2969_v51, %v595_v18  ;;  %v4564_v56 = vld [vmem:[#allocation12_spill] sm:$0xff]  ;;  %v652_v38 = vld [vmem:[#allocation5 + $0x100] sm:$0xff] }
  0xfc   : > { %2305 = vmatpush3.msra.mxu1 %v656_v52  ;;  %v2479_v34 = vpop.eup %2478  ;;  %899 = vmatprep.mubr.f32.mxu1 %v2473_v4  ;;  %v1086_v27 = vor.u32 %v3293_v20, %v3289_v32  ;;  %v2063_v53 = vadd.s32 4294967169, %v4562_v23  ;;  %2500 = vtanh.f32 %v533_v7  ;;  %v481_v28 = vadd.f32 %v449_v49, %v3270_v11  ;;  %v653_v52 = vld [vmem:[#allocation5 + $0x108] sm:$0xff]  ;;  %v668_v7 = vld [vmem:[#allocation5 + $0x180] sm:$0xff] }
  0xfd   : > { %2290 = vmatprep.subr.mxu1 %v671_v13  ;;  %v3323_v31 = vpop.eup %2480  ;;  %v537_v5 = vadd.f32 %v2967_v50, %v482_v10  ;;  %2204 = vmatprep.subr.mxu0 %v670_v24  ;;  %v1062_v33 = vand.u32 8388607, %v4527_v45  ;;  %v3332_v2 = vor.u32 %v1073_v8, %v1072_v15  ;;  %v3334_v37 = vor.u32 %v1076_v39, %v1075_v21 }
  0xfe   : > { %v3328_v58 = vpop.eup %2482  ;;  %2306 = vmatpush3.msra.mxu1 %v655_v40  ;;  %2205 = vmatpush3.msra.mxu0 %v654_v26  ;;  %v3336_v41 = vor.u32 %v1079_v42, %v1078_v35  ;;  %v3339_v50 = vand.u32 31, %v3316_v22  ;;  %v1096_v14 = vsel %vm1090_vm10, %v1083_v19, 920167782  ;;  %2502 = vtanh.f32 %v532_v43 }
  0xff   : > { %900 = vmatmul.mubr.f32.gmra.mxu1 %v2475_v48  ;;  %v2485_v11 = vpop.eup %2484  ;;  %2276 = vmatmul.mubr.msk.f32.gmra.mxu0 %vm603_vm9, %v4559_v0  ;;  %v1100_v49 = vsel %vm1090_vm10, %v1086_v27, 1326507024  ;;  %v3352_v51 = vadd.s32 1, %v2063_v53  ;;  %v4563_v0 = vld [vmem:[#allocation11_spill] sm:$0xff]  ;;  %v536_v63 = vadd.f32 %v2959_v46, %v481_v28  ;;  %2504 = vtanh.f32 %v537_v5 }
 0x100   : > { %2291 = vmatprep.subr.mxu1 %v670_v24  ;;  %v2487_v62 = vpop.eup %2486  ;;  %2206 = vmatprep.subr.mxu0 %v669_v59  ;;  %v1035_v10 = vmul.f32 %v4564_v56, %v4563_v0  ;;  %v1063_v32 = vor.u32 8388608, %v1062_v33  ;;  %v1095_v20 = vsel %vm1087_vm11, %v3332_v2, %v3334_v37  ;;  %v1097_v4 = vsel %vm1089_vm12, %v3336_v41, %v1096_v14 }
 0x101   : > { %2307 = vmatpush3.msra.mxu1 %v654_v26  ;;  %v3350_v13 = vpop.eup %2488  ;;  %2207 = vmatpush3.msra.mxu0 %v653_v52  ;;  %v3366_v18 = vsub.s32 32, %v3339_v50  ;;  %v1038_v15 = vmul.f32 %v4564_v56, %v2926_v25  ;;  %v1099_v8 = vsel %vm1087_vm11, %v3334_v37, %v3336_v41  ;;  %v1101_v21 = vsel %vm1089_vm12, %v1083_v19, %v1100_v49 }
 0x102   : > { %974 = vmatprep.mubr.f32.mxu0 %v2479_v34  ;;  %v2491_v40 = vpop.eup %2490  ;;  %904 = vmatprep.mubr.f32.mxu1 %v2485_v11  ;;  %2506 = vtanh.f32 %v536_v63  ;;  %v1098_v25 = vsel %vm1088_vm13, %v1095_v20, %v1097_v4  ;;  %v1102_v39 = vsel %vm1088_vm13, %v1099_v8, %v1101_v21  ;;  %v3381_v35 = vshll.u32 %v1063_v32, 8 }
 0x103   : > { %2292 = vmatprep.subr.mxu1 %v669_v59  ;;  %v2493_v46 = vpop.eup %2492  ;;  %2208 = vmatprep.subr.mxu0 %v668_v7  ;;  %vm1170_vm14 = vcmp.gt.s32.totalorder %v3352_v51, 0  ;;  %v3385_v42 = vadd.f32 %v2980_v55, %v1035_v10  ;;  %v3388_v26 = vadd.f32 %v2980_v55, %v1038_v15  ;;  %v3394_v34 = vshrl.u32 %v3316_v22, 5 }
 0x104   : > { %905 = vmatmul.mubr.f32.gmra.mxu1 %v2487_v62  ;;  %v2495_v48 = vpop.eup %2494  ;;  %2209 = vmatpush3.msra.mxu0 %v652_v38  ;;  %v3397_v43 = vmul.u32.u64.low %v3381_v35, %v1098_v25  ;;  %v3398_v27 = vmul.u32.u64.high %v3381_v35, %v1098_v25, %v3397_v43  ;;  %v1501_v23 = vshrl.u32 %v4530_v44, %v3366_v18  ;;  %v4526_v28 = vand.u32 2147483647, %v3150_v57 }
 0x105   : > { %2308 = vmatpush3.msra.mxu1 %v653_v52  ;;  %975 = vmatmul.mubr.f32.vlgmr.msra.gmra.mxu0 %v3313_v54  ;;  %v2497_v24 = vpop.eup %2496  ;;  %v1498_v54 = vshrl.u32 %v2672_v61, %v3366_v18  ;;  %v1497_v22 = vshll.u32 %v4528_v36, %v3339_v50  ;;  %v1489_v59 = vshrl.u32 %v4534_v29, %v3366_v18  ;;  %v1266_v11 = vand.u32 2139095040, %v3385_v42 }
 0x106   : > { %2293 = vmatprep.subr.mxu1 %v668_v7  ;;  %994 = vmatprep.mubr.f32.mxu1 %v2495_v48  ;;  %v1492_v52 = vshrl.u32 %v4532_v12, %v3366_v18  ;;  %v1500_v33 = vshll.u32 %v2672_v61, %v3339_v50  ;;  %v1578_v14 = vand.u32 2139095040, %v3388_v26  ;;  %v1488_v7 = vshll.u32 %v4537_v6, %v3339_v50 }
 0x107   : > { %2309 = vmatpush3.msra.mxu1 %v652_v38  ;;  %979 = vmatprep.mubr.f32.mxu0 %v3245_v9  ;;  %v2499_v19 = vpop.eup %2498  ;;  %v3405_v9 = vmul.u32.u64.low %v3381_v35, %v1102_v39  ;;  %v3406_v53 = vmul.u32.u64.high %v3381_v35, %v1102_v39, %v3405_v9  ;;  %v1499_v62 = vor.u32 %v1498_v54, %v1497_v22  ;;  %v1491_v49 = vshll.u32 %v4534_v29, %v3339_v50 }
 0x108   : > { %995 = vmatmul.mubr.f32.vlgmr.msra.gmra.mxu1 %v2493_v46  ;;  %v1494_v0 = vshll.u32 %v4532_v12, %v3339_v50  ;;  %v1502_v10 = vor.u32 %v1501_v23, %v1500_v33  ;;  %v1092_v38 = vsel %vm1090_vm10, %v3336_v41, 2102212464  ;;  %v1490_v20 = vor.u32 %v1489_v59, %v1488_v7 }
 0x109   : > { %999 = vmatprep.mubr.f32.mxu1 %v2497_v24  ;;  %980 = vmatmul.mubr.f32.gmra.mxu0 %v3208_v30  ;;  %v2501_v5 = vpop.eup %2500  ;;  %v1495_v30 = vshrl.u32 %v4528_v36, %v3366_v18  ;;  %v1493_v4 = vor.u32 %v1492_v52, %v1491_v49  ;;  %vm1506_vm15 = vcmp.lt.s32.totalorder %v3394_v34, 4  ;;  %v1171_v50 = vsel %vm1170_vm14, %v3352_v51, 0 }
 0x10a   : > { %984 = vmatprep.mubr.f32.mxu0 %v3328_v58  ;;  %v1071_v58 = vshrl.u32 %v4537_v6, %v3231_v3  ;;  %v1478_v3 = vand.u32 8388607, %v4526_v28  ;;  %v1267_v15 = vshrl.u32 %v1266_v11, 23  ;;  %v1579_v41 = vshrl.u32 %v1578_v14, 23 }
 0x10b   : > { %v2503_v63 = vpop.eup %2502  ;;  %v1496_v46 = vor.u32 %v1495_v30, %v1494_v0  ;;  %v1093_v8 = vsel %vm1089_vm12, %v3334_v37, %v1092_v38  ;;  %v1516_v21 = vsel %vm1506_vm15, %v1502_v10, 1326507024  ;;  %v1036_v51 = vmul.f32 %v4564_v56, %v2918_v17 }
 0x10c   : > { %1000 = vmatmul.mubr.f32.gmra.mxu1 %v2499_v19  ;;  %v2505_v32 = vpop.eup %2504  ;;  %v1113_v48 = vadd.s32 1, %v3398_v27  ;;  %vm1503_vm0 = vcmp.lt.s32.totalorder %v3394_v34, 1  ;;  %vm1505_vm1 = vcmp.lt.s32.totalorder %v3394_v34, 3  ;;  %vm1112_vm2 = vc.u32 %v3406_v53, %v3397_v43 }
 0x10d   : > { %1004 = vmatprep.mubr.f32.mxu1 %v2501_v5  ;;  %985 = vmatmul.mubr.f32.gmra.mxu0 %v3323_v31  ;;  %v1512_v31 = vsel %vm1506_vm15, %v1499_v62, 920167782  ;;  %v1511_v37 = vsel %vm1503_vm0, %v1490_v20, %v1493_v4  ;;  %v2067_v17 = vadd.s32 4294967169, %v1267_v15  ;;  %v1515_v39 = vsel %vm1503_vm0, %v1493_v4, %v1496_v46 }
 0x10e   : > { %989 = vmatprep.mubr.f32.mxu0 %v2491_v40  ;;  %v1091_v40 = vsel %vm1087_vm11, %v1071_v58, %v3332_v2  ;;  %v1479_v2 = vor.u32 8388608, %v1478_v3  ;;  %v1513_v24 = vsel %vm1505_vm1, %v1496_v46, %v1512_v31  ;;  %v1517_v54 = vsel %vm1505_vm1, %v1499_v62, %v1516_v21 }
 0x10f   : > { %v2507_v25 = vpop.eup %2506  ;;  %v2079_v19 = vadd.s32 4294967169, %v1579_v41  ;;  %vm1504_vm3 = vcmp.lt.s32.totalorder %v3394_v34, 2  ;;  %v1173_v23 = vand.u32 31, %v1171_v50  ;;  %v1114_v9 = vsel %vm1112_vm2, %v1113_v48, %v3398_v27 }
 0x110   : > { %1005 = vmatmul.mubr.f32.gmra.mxu1 %v2503_v63  ;;  %v1514_v22 = vsel %vm1504_vm3, %v1511_v37, %v1513_v24  ;;  %v3473_v5 = vadd.f32 %v2980_v55, %v1036_v51  ;;  %v1518_v59 = vsel %vm1504_vm3, %v1515_v39, %v1517_v54  ;;  %v1519_v52 = vshll.u32 %v1479_v2, 8 }
 0x111   : > { %1009 = vmatprep.mubr.f32.mxu1 %v2505_v32  ;;  %990 = vmatmul.mubr.f32.gmra.mxu0 %v3350_v13  ;;  %v1094_v13 = vsel %vm1088_vm13, %v1091_v40, %v1093_v8  ;;  %v1273_v30 = vadd.s32 1, %v2067_v17  ;;  %v1585_v33 = vadd.s32 1, %v2079_v19  ;;  %v1508_v27 = vsel %vm1506_vm15, %v1496_v46, 2102212464 }
 0x112   : > { %4565 = vst [vmem:[#allocation16_spill] sm:$0xff] %v3473_v5  ;;  %v1110_v47 = vmul.u32 %v3381_v35, %v1094_v13  ;;  %v3478_v14 = vmul.u32.u64.low %v1519_v52, %v1514_v22  ;;  %v3479_v58 = vmul.u32.u64.high %v1519_v52, %v1514_v22, %v3478_v14  ;;  %v3487_v49 = vsub.s32 32, %v1173_v23 }
 0x113   : > { %v3484_v62 = vmul.u32.u64.low %v1519_v52, %v1518_v59  ;;  %v3485_v7 = vmul.u32.u64.high %v1519_v52, %v1518_v59, %v3484_v62  ;;  %v1370_v35 = vand.u32 2139095040, %v3473_v5  ;;  %v1487_v0 = vshrl.u32 %v4537_v6, %v3366_v18 }
 0x114   : > { %1010 = vmatmul.mubr.f32.gmra.mxu1 %v2507_v25  ;;  %v1115_v11 = vadd.s32 %v1114_v9, %v1110_v47  ;;  %vm1274_vm4 = vcmp.gt.s32.totalorder %v1273_v30, 0  ;;  %v1039_v10 = vmul.f32 %v4564_v56, %v2994_v1  ;;  %vm1586_vm5 = vcmp.gt.s32.totalorder %v1585_v33, 0  ;;  %v2540_v25 = vld [vmem:[%s4508_s4] ss:$0 sm:$0xff] }
 0x115   : > { %v1507_v38 = vsel %vm1503_vm0, %v1487_v0, %v1490_v20  ;;  %v1509_v3 = vsel %vm1505_vm1, %v1493_v4, %v1508_v27  ;;  %v3498_v32 = vshrl.u32 %v1171_v50, 5  ;;  %v3500_v46 = vsel %vm1274_vm4, %v1273_v30, 0  ;;  %v4566_v50 = vld [vmem:[#allocation13_spill] sm:$0xff] }
 0x116   : > { %v1116_v63 = vadd.s32 536870912, %v1115_v11  ;;  %v1371_v15 = vshrl.u32 %v1370_v35, 23  ;;  %v1189_v18 = vshrl.u32 %v4530_v44, %v3487_v49  ;;  %v1587_v31 = vsel %vm1586_vm5, %v1585_v33, 0 }
 0x117   : > { %v3505_v41 = vadd.f32 %v2980_v55, %v1039_v10  ;;  %v1510_v1 = vsel %vm1504_vm3, %v1507_v38, %v1509_v3  ;;  %v1186_v56 = vshrl.u32 %v2672_v61, %v3487_v49  ;;  %v1529_v4 = vadd.s32 1, %v3479_v58 }
 0x118   : > { %v3511_v20 = vshrl.u32 %v1116_v63, 30  ;;  %v4525_v40 = vand.u32 2147483647, %v4566_v50  ;;  %v1188_v8 = vshll.u32 %v2672_v61, %v1173_v23  ;;  %vm1528_vm6 = vc.u32 %v3485_v7, %v3478_v14 }
 0x119   : > { %v1180_v21 = vshrl.u32 %v4532_v12, %v3487_v49  ;;  %v1183_v34 = vshrl.u32 %v4528_v36, %v3487_v49  ;;  %v1185_v51 = vshll.u32 %v4528_v36, %v1173_v23  ;;  %v1589_v48 = vand.u32 31, %v1587_v31 }
 0x11a   : > { %v1040_v2 = vmul.f32 %v2540_v25, %v3098_v60  ;;  %v1177_v37 = vshrl.u32 %v4534_v29, %v3487_v49  ;;  %v1190_v24 = vor.u32 %v1189_v18, %v1188_v8  ;;  %v1682_v17 = vand.u32 2139095040, %v3505_v41 }
 0x11b   : > { %v1179_v13 = vshll.u32 %v4534_v29, %v1173_v23  ;;  %v1182_v39 = vshll.u32 %v4532_v12, %v1173_v23  ;;  %v1187_v54 = vor.u32 %v1186_v56, %v1185_v51  ;;  %v1118_v19 = vshll.u32 %v3511_v20, 30 }
 0x11c   : > { %v1526_v9 = vmul.u32 %v1519_v52, %v1510_v1  ;;  %v1530_v22 = vsel %vm1528_vm6, %v1529_v4, %v3479_v58  ;;  %v1176_v47 = vshll.u32 %v4537_v6, %v1173_v23  ;;  %v1166_v60 = vand.u32 8388607, %v4525_v40 }
 0x11d   : > { %v3537_v59 = vor.u32 %v1180_v21, %v1179_v13  ;;  %v3539_v30 = vor.u32 %v1183_v34, %v1182_v39  ;;  %vm1194_vm7 = vcmp.lt.s32.totalorder %v3498_v32, 4  ;;  %v2071_v33 = vadd.s32 4294967169, %v1371_v15 }
 0x11e   : > { %v3543_v27 = vadd.f32 %v2980_v55, %v1040_v2  ;;  %v3545_v62 = vor.u32 %v1177_v37, %v1176_v47  ;;  %v1204_v52 = vsel %vm1194_vm7, %v1190_v24, 1326507024  ;;  %v3549_v58 = vsub.s32 32, %v1589_v48 }
 0x11f   : > { %v1531_v23 = vadd.s32 %v1530_v22, %v1526_v9  ;;  %v1200_v35 = vsel %vm1194_vm7, %v1187_v54, 920167782  ;;  %v1683_v0 = vshrl.u32 %v1682_v17, 23  ;;  %v3553_v10 = vsub.s32 %v1115_v11, %v1118_v19 }
 0x120   : > { %vm1191_vm8 = vcmp.lt.s32.totalorder %v3498_v32, 1  ;;  %vm1193_vm9 = vcmp.lt.s32.totalorder %v3498_v32, 3  ;;  %v3558_v55 = vand.u32 31, %v3500_v46  ;;  %v1167_v63 = vor.u32 8388608, %v1166_v60 }
 0x121   : > { %v1203_v38 = vsel %vm1191_vm8, %v3537_v59, %v3539_v30  ;;  %v1205_v3 = vsel %vm1193_vm9, %v1187_v54, %v1204_v52  ;;  %v1377_v15 = vadd.s32 1, %v2071_v33  ;;  %v1786_v11 = vand.u32 2139095040, %v3543_v27 }
 0x122   : > { %v1199_v18 = vsel %vm1191_vm8, %v3545_v62, %v3537_v59  ;;  %v1201_v1 = vsel %vm1193_vm9, %v3539_v30, %v1200_v35  ;;  %v3574_v56 = vshrl.u32 %v1587_v31, 5  ;;  %v1532_v4 = vadd.s32 536870912, %v1531_v23 }
 0x123   : > { %vm1192_vm10 = vcmp.lt.s32.totalorder %v3498_v32, 2  ;;  %v1602_v8 = vshrl.u32 %v2672_v61, %v3549_v58  ;;  %v2083_v21 = vadd.s32 4294967169, %v1683_v0  ;;  %v1121_v34 = vsub.s32 0, %v3553_v10 }
 0x124   : > { %v1206_v51 = vsel %vm1192_vm10, %v1203_v38, %v1205_v3  ;;  %v1605_v25 = vshrl.u32 %v4530_v44, %v3549_v58  ;;  %v1202_v2 = vsel %vm1192_vm10, %v1199_v18, %v1201_v1  ;;  %v3586_v31 = vshll.u32 %v1167_v63, 8 }
 0x125   : > { %v4523_v37 = vand.u32 2147483647, %v3388_v26  ;;  %v1601_v24 = vshll.u32 %v4528_v36, %v1589_v48  ;;  %v1593_v17 = vshrl.u32 %v4534_v29, %v3549_v58  ;;  %v1596_v13 = vshrl.u32 %v4532_v12, %v3549_v58 }
 0x126   : > { %v1599_v39 = vshrl.u32 %v4528_v36, %v3549_v58  ;;  %v1604_v54 = vshll.u32 %v2672_v61, %v1589_v48  ;;  %v3597_v19 = vshrl.u32 %v1532_v4, 30  ;;  %v1592_v60 = vshll.u32 %v4537_v6, %v1589_v48 }
 0x127   : > { %v3600_v9 = vmul.u32.u64.low %v3586_v31, %v1206_v51  ;;  %v3601_v22 = vmul.u32.u64.high %v3586_v31, %v1206_v51, %v3600_v9  ;;  %v1603_v47 = vor.u32 %v1602_v8, %v1601_v24  ;;  %v1595_v33 = vshll.u32 %v4534_v29, %v1589_v48 }
 0x128   : > { %v1598_v52 = vshll.u32 %v4532_v12, %v1589_v48  ;;  %v1606_v35 = vor.u32 %v1605_v25, %v1604_v54  ;;  %v1689_v0 = vadd.s32 1, %v2083_v21  ;;  %v1582_v3 = vand.u32 8388607, %v4523_v37 }
 0x129   : > { %v3607_v63 = vmul.u32.u64.low %v3586_v31, %v1202_v2  ;;  %v3608_v38 = vmul.u32.u64.high %v3586_v31, %v1202_v2, %v3607_v63  ;;  %v3613_v18 = vor.u32 %v1593_v17, %v1592_v60  ;;  %v3615_v1 = vor.u32 %v1596_v13, %v1595_v33 }
 0x12a   : > { %v1600_v4 = vor.u32 %v1599_v39, %v1598_v52  ;;  %vm1610_vm11 = vcmp.lt.s32.totalorder %v3574_v56, 4  ;;  %v2060_v8 = vmin.u32 %v1121_v34, %v3553_v10  ;;  %v1534_v48 = vshll.u32 %v3597_v19, 30 }
 0x12b   : > { %v1616_v21 = vsel %vm1610_vm11, %v1603_v47, 920167782  ;;  %v3623_v51 = vsub.s32 32, %v3558_v55  ;;  %vm1378_vm12 = vcmp.gt.s32.totalorder %v1377_v15, 0  ;;  %v1787_v25 = vshrl.u32 %v1786_v11, 23 }
 0x12c   : > { %v1620_v2 = vsel %vm1610_vm11, %v1606_v35, 1326507024  ;;  %vm1690_vm13 = vcmp.gt.s32.totalorder %v1689_v0, 0  ;;  %v1175_v24 = vshrl.u32 %v4537_v6, %v3487_v49  ;;  %vm1607_vm14 = vcmp.lt.s32.totalorder %v3574_v56, 1 }
 0x12d   : > { %vm1609_vm15 = vcmp.lt.s32.totalorder %v3574_v56, 3  ;;  %v1196_v34 = vsel %vm1194_vm7, %v3539_v30, 2102212464  ;;  %v1583_v17 = vor.u32 8388608, %v1582_v3  ;;  %v1615_v11 = vsel %vm1607_vm14, %v3613_v18, %v3615_v1 }
 0x12e   : > { %v1617_v13 = vsel %vm1609_vm15, %v1600_v4, %v1616_v21  ;;  %v1123_v39 = vclz %v2060_v8  ;;  %v3640_v54 = vsub.s32 %v1531_v23, %v1534_v48  ;;  %v1619_v49 = vsel %vm1607_vm14, %v3615_v1, %v1600_v4 }
 0x12f   : > { %v1621_v9 = vsel %vm1609_vm15, %v1603_v47, %v1620_v2  ;;  %v3648_v30 = vshrl.u32 %v3500_v46, 5  ;;  %v3651_v60 = vsel %vm1378_vm12, %v1377_v15, 0  ;;  %v3654_v33 = vsel %vm1690_vm13, %v1689_v0, 0 }
 0x130   : > { %vm1608_vm0 = vcmp.lt.s32.totalorder %v3574_v56, 2  ;;  %v1195_v23 = vsel %vm1191_vm8, %v1175_v24, %v3545_v62  ;;  %v1197_v52 = vsel %vm1193_vm9, %v3537_v59, %v1196_v34  ;;  %v1217_v47 = vadd.s32 1, %v3608_v38 }
 0x131   : > { %v1618_v46 = vsel %vm1608_vm0, %v1615_v11, %v1617_v13  ;;  %v2087_v15 = vadd.s32 4294967169, %v1787_v25  ;;  %vm1216_vm1 = vc.u32 %v3601_v22, %v3607_v63  ;;  %v1622_v35 = vsel %vm1608_vm0, %v1619_v49, %v1621_v9 }
 0x132   : > { %v3670_v0 = vshll.u32 %v1583_v17, 8  ;;  %v3673_v62 = vand.u32 31, %v3654_v33  ;;  %v2061_v3 = vadd.s32 4294967294, %v1123_v39  ;;  %v1537_v59 = vsub.s32 0, %v3640_v54 }
 0x133   : > { %v1293_v8 = vshrl.u32 %v4530_v44, %v3623_v51  ;;  %v1198_v48 = vsel %vm1192_vm10, %v1195_v23, %v1197_v52  ;;  %v1290_v2 = vshrl.u32 %v2672_v61, %v3623_v51  ;;  %v1218_v24 = vsel %vm1216_vm1, %v1217_v47, %v3608_v38 }
 0x134   : > { %v3681_v21 = vmul.u32.u64.low %v3670_v0, %v1618_v46  ;;  %v3682_v25 = vmul.u32.u64.high %v3670_v0, %v1618_v46, %v3681_v21  ;;  %v3689_v34 = vmul.u32.u64.low %v3670_v0, %v1622_v35  ;;  %v3690_v17 = vmul.u32.u64.high %v3670_v0, %v1622_v35, %v3689_v34 }
 0x135   : > { %v1292_v11 = vshll.u32 %v2672_v61, %v3558_v55  ;;  %v4524_v32 = vand.u32 2147483647, %v3385_v42  ;;  %v1284_v13 = vshrl.u32 %v4532_v12, %v3623_v51  ;;  %v1287_v39 = vshrl.u32 %v4528_v36, %v3623_v51 }
 0x136   : > { %v1289_v49 = vshll.u32 %v4528_v36, %v3558_v55  ;;  %v2076_v38 = vmin.u32 %v1537_v59, %v3640_v54  ;;  %v1214_v9 = vmul.u32 %v3586_v31, %v1198_v48  ;;  %v1281_v23 = vshrl.u32 %v4534_v29, %v3623_v51 }
 0x137   : > { %v1294_v52 = vor.u32 %v1293_v8, %v1292_v11  ;;  %v1612_v47 = vsel %vm1610_vm11, %v1600_v4, 2102212464  ;;  %v1283_v46 = vshll.u32 %v4534_v29, %v3558_v55  ;;  %v1286_v35 = vshll.u32 %v4532_v12, %v3558_v55 }
 0x138   : > { %v1291_v34 = vor.u32 %v1290_v2, %v1289_v49  ;;  %vm2062_vm2 = vcmp.lt.s32.totalorder %v2061_v3, 0  ;;  %v3711_v37 = vadd.s32 %v1218_v24, %v1214_v9  ;;  %v1591_v31 = vshrl.u32 %v4537_v6, %v3549_v58 }
 0x139   : > { %v1280_v59 = vshll.u32 %v4537_v6, %v3558_v55  ;;  %v1270_v8 = vand.u32 8388607, %v4524_v32  ;;  %v3719_v4 = vor.u32 %v1284_v13, %v1283_v46  ;;  %v1288_v48 = vor.u32 %v1287_v39, %v1286_v35 }
 0x13a   : > { %vm1298_vm3 = vcmp.lt.s32.totalorder %v3648_v30, 4  ;;  %v1611_v2 = vsel %vm1607_vm14, %v1591_v31, %v3613_v18  ;;  %v1613_v24 = vsel %vm1609_vm15, %v3615_v1, %v1612_v47  ;;  %v3730_v11 = vsel %vm2062_vm2, 0, %v2061_v3 }
 0x13b   : > { %v1282_v58 = vor.u32 %v1281_v23, %v1280_v59  ;;  %v1308_v55 = vsel %vm1298_vm3, %v1294_v52, 1326507024  ;;  %v1539_v49 = vclz %v2076_v38  ;;  %v1633_v13 = vadd.s32 1, %v3682_v25 }
 0x13c   : > { %v1304_v39 = vsel %vm1298_vm3, %v1291_v34, 920167782  ;;  %v1220_v9 = vadd.s32 536870912, %v3711_v37  ;;  %vm1632_vm4 = vc.u32 %v3690_v17, %v3681_v21  ;;  %vm1295_vm5 = vcmp.lt.s32.totalorder %v3648_v30, 1 }
 0x13d   : > { %vm1297_vm6 = vcmp.lt.s32.totalorder %v3648_v30, 3  ;;  %v1614_v18 = vsel %vm1608_vm0, %v1611_v2, %v1613_v24  ;;  %v1271_v1 = vor.u32 8388608, %v1270_v8  ;;  %v1307_v3 = vsel %vm1295_vm5, %v3719_v4, %v1288_v48 }
 0x13e   : > { %v1309_v38 = vsel %vm1297_vm6, %v1291_v34, %v1308_v55  ;;  %v3748_v23 = vand.u32 31, %v3651_v60  ;;  %v3751_v52 = vsub.s32 32, %v3673_v62  ;;  %v1303_v47 = vsel %vm1295_vm5, %v1282_v58, %v3719_v4 }
 0x13f   : > { %v1305_v56 = vsel %vm1297_vm6, %v1288_v48, %v1304_v39  ;;  %v3758_v46 = vadd.s32 1, %v2087_v15  ;;  %v3761_v35 = vshrl.u32 %v3654_v33, 5  ;;  %v1634_v34 = vsel %vm1632_vm4, %v1633_v13, %v3682_v25 }
 0x140   : > { %vm1296_vm7 = vcmp.lt.s32.totalorder %v3648_v30, 2  ;;  %v1111_v31 = vadd.s32 %v3397_v43, %v3406_v53  ;;  %v1131_v59 = vsub.s32 4294967266, %v3730_v11  ;;  %v1630_v8 = vmul.u32 %v3670_v0, %v1614_v18 }
 0x141   : > { %v1310_v2 = vsel %vm1296_vm7, %v1307_v3, %v1309_v38  ;;  %v2077_v24 = vadd.s32 4294967294, %v1539_v49  ;;  %v3771_v15 = vshrl.u32 %v1220_v9, 30  ;;  %v1306_v33 = vsel %vm1296_vm7, %v1303_v47, %v1305_v56 }
 0x142   : > { %v3775_v55 = vshll.u32 %v1271_v1, 8  ;;  %v3777_v25 = vadd.s32 %v1634_v34, %v1630_v8  ;;  %v1279_v43 = vshrl.u32 %v4537_v6, %v3623_v51  ;;  %v4536_v53 = vand.u32 2147483647, %v3505_v41 }
 0x143   : > { %v1706_v0 = vshrl.u32 %v2672_v61, %v3751_v52  ;;  %v1700_v39 = vshrl.u32 %v4532_v12, %v3751_v52  ;;  %v1703_v9 = vshrl.u32 %v4528_v36, %v3751_v52  ;;  %v1697_v51 = vshrl.u32 %v4534_v29, %v3751_v52 }
 0x144   : > { %v3785_v13 = vmul.u32.u64.low %v3775_v55, %v1310_v2  ;;  %v3786_v49 = vmul.u32.u64.high %v3775_v55, %v1310_v2, %v3785_v13  ;;  %v3793_v18 = vmul.u32.u64.low %v3775_v55, %v1306_v33  ;;  %v3794_v1 = vmul.u32.u64.high %v3775_v55, %v1306_v33, %v3793_v18 }
 0x145   : > { %v1705_v3 = vshll.u32 %v4528_v36, %v3673_v62  ;;  %v1699_v38 = vshll.u32 %v4534_v29, %v3673_v62  ;;  %v1702_v47 = vshll.u32 %v4532_v12, %v3673_v62  ;;  %v1708_v56 = vshll.u32 %v2672_v61, %v3673_v62 }
 0x146   : > { %v1709_v34 = vshrl.u32 %v4530_v44, %v3751_v52  ;;  %v1636_v8 = vadd.s32 536870912, %v3777_v25  ;;  %v1300_v2 = vsel %vm1298_vm3, %v1288_v48, 2102212464  ;;  %v1696_v33 = vshll.u32 %v4537_v6, %v3673_v62 }
 0x147   : > { %v1707_v13 = vor.u32 %v1706_v0, %v1705_v3  ;;  %v1686_v32 = vand.u32 8388607, %v4536_v53  ;;  %v1701_v40 = vor.u32 %v1700_v39, %v1699_v38  ;;  %v1704_v28 = vor.u32 %v1703_v9, %v1702_v47 }
 0x148   : > { %v1710_v45 = vor.u32 %v1709_v34, %v1708_v56  ;;  %v1127_v36 = vsub.s32 32, %v3730_v11  ;;  %v1128_v44 = vshll.u32 %v3553_v10, %v3730_v11  ;;  %v1132_v12 = vadd.s32 127, %v1131_v59 }
 0x149   : > { %v1698_v29 = vor.u32 %v1697_v51, %v1696_v33  ;;  %vm2078_vm8 = vcmp.lt.s32.totalorder %v2077_v24, 0  ;;  %v1222_v48 = vshll.u32 %v3771_v15, 30  ;;  %v1299_v62 = vsel %vm1295_vm5, %v1279_v43, %v1282_v58 }
 0x14a   : > { %vm1714_vm9 = vcmp.lt.s32.totalorder %v3761_v35, 4  ;;  %vm1794_vm10 = vcmp.gt.s32.totalorder %v3758_v46, 0  ;;  %v1301_v0 = vsel %vm1297_vm6, %v3719_v4, %v1300_v2  ;;  %vm1711_vm11 = vcmp.lt.s32.totalorder %v3761_v35, 1 }
 0x14b   : > { %v1720_v10 = vsel %vm1714_vm9, %v1707_v13, 920167782  ;;  %v1724_v11 = vsel %vm1714_vm9, %v1710_v45, 1326507024  ;;  %v3832_v59 = vshrl.u32 %v1636_v8, 30  ;;  %v1687_v39 = vor.u32 8388608, %v1686_v32 }
 0x14c   : > { %vm1713_vm12 = vcmp.lt.s32.totalorder %v3761_v35, 3  ;;  %v1723_v58 = vsel %vm1711_vm11, %v1701_v40, %v1704_v28  ;;  %v1321_v43 = vadd.s32 1, %v3794_v1  ;;  %v1719_v4 = vsel %vm1711_vm11, %v1698_v29, %v1701_v40 }
 0x14d   : > { %v1721_v9 = vsel %vm1713_vm12, %v1704_v28, %v1720_v10  ;;  %v1725_v51 = vsel %vm1713_vm12, %v1707_v13, %v1724_v11  ;;  %v3845_v45 = vsel %vm2078_vm8, 0, %v2077_v24  ;;  %v1302_v32 = vsel %vm1296_vm7, %v1299_v62, %v1301_v0 }
 0x14e   : > { %vm1320_vm13 = vc.u32 %v3786_v49, %v3793_v18  ;;  %vm1712_vm14 = vcmp.lt.s32.totalorder %v3761_v35, 2  ;;  %v1129_v3 = vshrl.u32 %v1111_v31, %v1127_v36  ;;  %v3853_v38 = vsub.s32 %v3711_v37, %v1222_v48 }
 0x14f   : > { %v1716_v47 = vsel %vm1714_vm9, %v1704_v28, 2102212464  ;;  %v1726_v56 = vsel %vm1712_vm14, %v1723_v58, %v1725_v51  ;;  %v1133_v24 = vshll.u32 %v1132_v12, 23  ;;  %v1695_v30 = vshrl.u32 %v4537_v6, %v3751_v52 }
 0x150   : > { %v1722_v34 = vsel %vm1712_vm14, %v1719_v4, %v1721_v9  ;;  %v1727_v8 = vshll.u32 %v1687_v39, 8  ;;  %v1547_v2 = vsub.s32 4294967266, %v3845_v45  ;;  %v1638_v36 = vshll.u32 %v3832_v59, 30 }
 0x151   : > { %v1318_v37 = vmul.u32 %v3775_v55, %v1302_v32  ;;  %v1322_v31 = vsel %vm1320_vm13, %v1321_v43, %v3794_v1  ;;  %v1715_v28 = vsel %vm1711_vm11, %v1695_v30, %v1698_v29  ;;  %v1717_v12 = vsel %vm1713_vm12, %v1701_v40, %v1716_v47 }
 0x152   : > { %v3871_v33 = vmul.u32.u64.low %v1727_v8, %v1726_v56  ;;  %v3872_v52 = vmul.u32.u64.high %v1727_v8, %v1726_v56, %v3871_v33  ;;  %v1130_v13 = vor.u32 %v1129_v3, %v1128_v44  ;;  %v1225_v48 = vsub.s32 0, %v3853_v38 }
 0x153   : > { %v3875_v62 = vmul.u32.u64.low %v1727_v8, %v1722_v34  ;;  %v3876_v0 = vmul.u32.u64.high %v1727_v8, %v1722_v34, %v3875_v62  ;;  %v1134_v10 = vor.u32 4788187, %v1133_v24  ;;  %v1543_v55 = vsub.s32 32, %v3845_v45 }
 0x154   : > { %v3880_v1 = vadd.s32 %v1322_v31, %v1318_v37  ;;  %v3883_v29 = vshrl.u32 %v3651_v60, 5  ;;  %v3886_v40 = vsub.s32 32, %v3748_v23  ;;  %v1548_v11 = vadd.s32 127, %v1547_v2 }
 0x155   : > { %v1718_v44 = vsel %vm1712_vm14, %v1715_v28, %v1717_v12  ;;  %v3893_v39 = vsel %vm1794_vm10, %v3758_v46, 0  ;;  %v1527_v58 = vadd.s32 %v3478_v14, %v3485_v7  ;;  %v3898_v43 = vsub.s32 %v3777_v25, %v1638_v36 }
 0x156   : > { %vm1736_vm15 = vc.u32 %v3872_v52, %v3875_v62  ;;  %v1137_v60 = vcvt.s32.f32 %v1130_v13  ;;  %v2064_v35 = vmin.u32 %v1225_v48, %v3853_v38  ;;  %v1737_v9 = vadd.s32 1, %v3876_v0 }
 0x157   : > { %v1135_v51 = vand.u32 2147483647, %v1134_v10  ;;  %v1545_v32 = vshrl.u32 %v1527_v58, %v1543_v55  ;;  %v1324_v46 = vadd.s32 536870912, %v3880_v1  ;;  %v1734_v3 = vmul.u32 %v1727_v8, %v1718_v44 }
 0x158   : > { %v1549_v47 = vshll.u32 %v1548_v11, 23  ;;  %v1738_v14 = vsel %vm1736_vm15, %v1737_v9, %v3876_v0  ;;  %v4539_v7 = vand.u32 2147483647, %v3473_v5  ;;  %v1394_v25 = vshrl.u32 %v2672_v61, %v3886_v40 }
 0x159   : > { %v1641_v56 = vsub.s32 0, %v3898_v43  ;;  %v1739_v24 = vadd.s32 %v1738_v14, %v1734_v3  ;;  %v4567_v30 = vmov 2475754826   ;;  %v4568_v2 = vmov 2131351028  }
 0x15a   : > { %v1385_v34 = vshrl.u32 %v4567_v30, %v3886_v40  ;;  %v1388_v36 = vshrl.u32 %v4568_v2, %v3886_v40  ;;  %v1227_v37 = vclz %v2064_v35  ;;  %v4569_v8 = vmov 2102212464  }
 0x15b   : > { %v1391_v31 = vshrl.u32 %v4569_v8, %v3886_v40  ;;  %v1393_v28 = vshll.u32 %v4569_v8, %v3748_v23  ;;  %v4570_v12 = vmov 1326507024   ;;  %v3921_v13 = vshrl.u32 %v1324_v46, 30 }
 0x15c   : > { %v1397_v33 = vshrl.u32 %v4570_v12, %v3886_v40  ;;  %v1740_v48 = vadd.s32 536870912, %v1739_v24  ;;  %v1384_v0 = vshll.u32 %v4537_v6, %v3748_v23  ;;  %v1387_v10 = vshll.u32 %v4567_v30, %v3748_v23 }
 0x15d   : > { %v1374_v55 = vand.u32 8388607, %v4539_v7  ;;  %v1390_v11 = vshll.u32 %v4568_v2, %v3748_v23  ;;  %v1395_v44 = vor.u32 %v1394_v25, %v1393_v28  ;;  %v1396_v58 = vshll.u32 %v2672_v61, %v3748_v23 }
 0x15e   : > { %v2080_v35 = vmin.u32 %v1641_v56, %v3898_v43  ;;  %v3934_v9 = vshrl.u32 %v1740_v48, 30  ;;  %v1386_v46 = vor.u32 %v1385_v34, %v1384_v0  ;;  %v1389_v3 = vor.u32 %v1388_v36, %v1387_v10 }
 0x15f   : > { %v1544_v14 = vshll.u32 %v3640_v54, %v3845_v45  ;;  %v2065_v53 = vadd.s32 4294967294, %v1227_v37  ;;  %v1392_v4 = vor.u32 %v1391_v31, %v1390_v11  ;;  %v1398_v6 = vor.u32 %v1397_v33, %v1396_v58 }
 0x160   : > { %4571 = vst [vmem:[#allocation14_spill] sm:$0xff] %v3934_v9  ;;  %v1138_v7 = vmul.f32 %v1137_v60, %v1135_v51  ;;  %v1326_v5 = vshll.u32 %v3921_v13, 30  ;;  %v1742_v25 = vshll.u32 %v3934_v9, 30  ;;  %vm1402_vm0 = vcmp.lt.s32.totalorder %v3883_v29, 4 }
 0x161   : > { %v1546_v23 = vor.u32 %v1545_v32, %v1544_v14  ;;  %v1375_v28 = vor.u32 8388608, %v1374_v55  ;;  %vm1399_vm1 = vcmp.lt.s32.totalorder %v3883_v29, 1  ;;  %v1408_v56 = vsel %vm1402_vm0, %v1395_v44, 920167782 }
 0x162   : > { %v1550_v34 = vor.u32 4788187, %v1549_v47  ;;  %v1643_v36 = vclz %v2080_v35  ;;  %vm1401_vm2 = vcmp.lt.s32.totalorder %v3883_v29, 3  ;;  %v1407_v54 = vsel %vm1399_vm1, %v1386_v46, %v1389_v3 }
 0x163   : > { %vm2066_vm3 = vcmp.lt.s32.totalorder %v2065_v53, 0  ;;  %v1409_v45 = vsel %vm1401_vm2, %v1392_v4, %v1408_v56  ;;  %v1411_v60 = vsel %vm1399_vm1, %v1389_v3, %v1392_v4  ;;  %v1412_v51 = vsel %vm1402_vm0, %v1398_v6, 1326507024 }
 0x164   : > { %v3954_v32 = vsub.s32 %v3880_v1, %v1326_v5  ;;  %v3956_v47 = vsub.s32 %v1739_v24, %v1742_v25  ;;  %vm1400_vm4 = vcmp.lt.s32.totalorder %v3883_v29, 2  ;;  %v1404_v37 = vsel %vm1402_vm0, %v1392_v4, 2102212464 }
 0x165   : > { %v4572_v31 = vmov 683565275   ;;  %v1410_v48 = vsel %vm1400_vm4, %v1407_v54, %v1409_v45  ;;  %v1413_v0 = vsel %vm1401_vm2, %v1395_v44, %v1412_v51  ;;  %v1415_v6 = vshll.u32 %v1375_v28, 8 }
 0x166   : > { %v1383_v33 = vshrl.u32 %v4572_v31, %v3886_v40  ;;  %v1551_v10 = vand.u32 2147483647, %v1550_v34  ;;  %v3967_v5 = vsel %vm2066_vm3, 0, %v2065_v53  ;;  %v2081_v1 = vadd.s32 4294967294, %v1643_v36 }
 0x167   : > { %v1414_v24 = vsel %vm1400_vm4, %v1411_v60, %v1413_v0  ;;  %v1405_v40 = vsel %vm1401_vm2, %v1389_v3, %v1404_v37  ;;  %v1329_v58 = vsub.s32 0, %v3954_v32  ;;  %v1745_v44 = vsub.s32 0, %v3956_v47 }
 0x168   : > { %v1403_v4 = vsel %vm1399_vm1, %v1383_v33, %v1386_v46  ;;  %v3975_v55 = vmul.u32.u64.low %v1415_v6, %v1414_v24  ;;  %v3976_v11 = vmul.u32.u64.high %v1415_v6, %v1414_v24, %v3975_v55  ;;  %v1797_v14 = vand.u32 31, %v3893_v39 }
 0x169   : > { %v3980_v35 = vmul.u32.u64.low %v1415_v6, %v1410_v48  ;;  %v3981_v53 = vmul.u32.u64.high %v1415_v6, %v1410_v48, %v3980_v35  ;;  %vm1057_vm5 = vcmp.lt.s32.totalorder %v4561_v16, 0  ;;  %v1553_v25 = vcvt.s32.f32 %v1546_v23 }
 0x16a   : > { %v1139_v46 = vxor.u32 2147483648, %v1138_v7  ;;  %v4573_v3 = vsub.s32 4, %v3511_v20  ;;  %v1406_v56 = vsel %vm1400_vm4, %v1403_v4, %v1405_v40  ;;  %v4574_v34 = vand.u32 2147483647, %v4561_v16 }
 0x16b   : > { %v4001_v54 = vmul.f32 %v1553_v25, %v1551_v10  ;;  %v1235_v23 = vsub.s32 4294967266, %v3967_v5  ;;  %vm1424_vm7 = vc.u32 %v3976_v11, %v3980_v35  ;;  %vm2082_vm8 = vcmp.lt.s32.totalorder %v2081_v1, 0 }
 0x16c   : > { %v3991_v28 = vsel %vm1057_vm5, %v4573_v3, %v3511_v20  ;;  %vm3997_vm6 = vcmp.le.f32.partialorder %v4574_v34, 0.7853982  ;;  %v2068_v20 = vmin.u32 %v1329_v58, %v3954_v32  ;;  %v2084_v45 = vmin.u32 %v1745_v44, %v3956_v47 }
 0x16d   : > { %v1425_v29 = vadd.s32 1, %v3981_v53  ;;  %v4010_v60 = vshrl.u32 %v3893_v39, 5  ;;  %v1798_v51 = vsub.s32 32, %v1797_v14  ;;  %v1422_v33 = vmul.u32 %v1415_v6, %v1406_v56 }
 0x16e   : > { %v4017_v48 = vsel %vm1057_vm5, %v1139_v46, %v1138_v7  ;;  %v1215_v10 = vadd.s32 %v3607_v63, %v3601_v22  ;;  %v1236_v4 = vadd.s32 127, %v1235_v23  ;;  %v4024_v40 = vsel %vm2082_vm8, 0, %v2081_v1 }
 0x16f   : > { %v1426_v24 = vsel %vm1424_vm7, %v1425_v29, %v3981_v53  ;;  %v1331_v58 = vclz %v2068_v20  ;;  %v1747_v44 = vclz %v2084_v45  ;;  %v1783_v6 = vand.u32 2147483647, %v3543_v27 }
 0x170   : > { %v1427_v55 = vadd.s32 %v1426_v24, %v1422_v33  ;;  %v1800_v7 = vshll.u32 %v4572_v31, %v1797_v14  ;;  %v1801_v46 = vshrl.u32 %v4567_v30, %v1798_v51  ;;  %v1809_v3 = vshll.u32 %v4569_v8, %v1797_v14 }
 0x171   : > { %v1810_v22 = vshrl.u32 %v2672_v61, %v1798_v51  ;;  %v1803_v63 = vshll.u32 %v4567_v30, %v1797_v14  ;;  %v1804_v53 = vshrl.u32 %v4568_v2, %v1798_v51  ;;  %v1806_v1 = vshll.u32 %v4568_v2, %v1797_v14 }
 0x172   : > { %v1428_v25 = vadd.s32 536870912, %v1427_v55  ;;  %v1807_v56 = vshrl.u32 %v4569_v8, %v1798_v51  ;;  %v1231_v34 = vsub.s32 32, %v3967_v5  ;;  %v1232_v23 = vshll.u32 %v3853_v38, %v3967_v5 }
 0x173   : > { %v1811_v45 = vor.u32 %v1810_v22, %v1809_v3  ;;  %v1651_v29 = vsub.s32 4294967266, %v4024_v40  ;;  %v2069_v33 = vadd.s32 4294967294, %v1331_v58  ;;  %v1812_v24 = vshll.u32 %v2672_v61, %v1797_v14 }
 0x174   : > { %v4038_v20 = vshrl.u32 %v1428_v25, 30  ;;  %v1813_v30 = vshrl.u32 %v4570_v12, %v1798_v51  ;;  %v1237_v37 = vshll.u32 %v1236_v4, 23  ;;  %v2085_v0 = vadd.s32 4294967294, %v1747_v44 }
 0x175   : > { %v1790_v8 = vand.u32 8388607, %v1783_v6  ;;  %v1802_v39 = vor.u32 %v1801_v46, %v1800_v7  ;;  %v1805_v9 = vor.u32 %v1804_v53, %v1803_v63  ;;  %v1808_v38 = vor.u32 %v1807_v56, %v1806_v1 }
 0x176   : > { %v1430_v2 = vshll.u32 %v4038_v20, 30  ;;  %vm1818_vm9 = vcmp.lt.s32.totalorder %v4010_v60, 4  ;;  %vm1815_vm10 = vcmp.lt.s32.totalorder %v4010_v60, 1  ;;  %vm1817_vm11 = vcmp.lt.s32.totalorder %v4010_v60, 3 }
 0x177   : > { %v1824_v61 = vsel %vm1818_vm9, %v1811_v45, 920167782  ;;  %v1233_v12 = vshrl.u32 %v1215_v10, %v1231_v34  ;;  %v1652_v14 = vadd.s32 127, %v1651_v29  ;;  %vm2070_vm12 = vcmp.lt.s32.totalorder %v2069_v33, 0 }
 0x178   : > { %v4047_v5 = vsub.s32 %v1427_v55, %v1430_v2  ;;  %v1814_v4 = vor.u32 %v1813_v30, %v1812_v24  ;;  %v1238_v58 = vor.u32 4788187, %v1237_v37  ;;  %v1631_v44 = vadd.s32 %v3681_v21, %v3690_v17 }
 0x179   : > { %v1647_v7 = vsub.s32 32, %v4024_v40  ;;  %vm1473_vm13 = vcmp.lt.s32.totalorder %v3150_v57, 0  ;;  %v1791_v25 = vor.u32 8388608, %v1790_v8  ;;  %vm1816_vm14 = vcmp.lt.s32.totalorder %v4010_v60, 2 }
 0x17a   : > { %v1433_v55 = vsub.s32 0, %v4047_v5  ;;  %v1823_v46 = vsel %vm1815_vm10, %v1802_v39, %v1805_v9  ;;  %v1825_v10 = vsel %vm1817_vm11, %v1808_v38, %v1824_v61  ;;  %v4063_v3 = vsel %vm2070_vm12, 0, %v2069_v33 }
 0x17b   : > { %vm2086_vm15 = vcmp.lt.s32.totalorder %v2085_v0, 0  ;;  %v1799_v17 = vshrl.u32 %v4572_v31, %v1798_v51  ;;  %v1234_v37 = vor.u32 %v1233_v12, %v1232_v23  ;;  %v1653_v22 = vshll.u32 %v1652_v14, 23 }
 0x17c   : > { %v2072_v21 = vmin.u32 %v1433_v55, %v4047_v5  ;;  %v1820_v63 = vsel %vm1818_vm9, %v1808_v38, 2102212464  ;;  %v1828_v53 = vsel %vm1818_vm9, %v1814_v4, 1326507024  ;;  %v1648_v1 = vshll.u32 %v3898_v43, %v4024_v40 }
 0x17d   : > { %v1826_v34 = vsel %vm1816_vm14, %v1823_v46, %v1825_v10  ;;  %v1827_v29 = vsel %vm1815_vm10, %v1805_v9, %v1808_v38  ;;  %v1649_v33 = vshrl.u32 %v1631_v44, %v1647_v7  ;;  %v1339_v31 = vsub.s32 4294967266, %v4063_v3 }
 0x17e   : > { %v1435_v56 = vclz %v2072_v21  ;;  %v4078_v51 = vsel %vm2086_vm15, 0, %v2085_v0  ;;  %v1831_v23 = vshll.u32 %v1791_v25, 8  ;;  %v4577_v24 = vand.u32 2147483647, %v3150_v57 }
 0x17f   : > { %v1819_v40 = vsel %vm1815_vm10, %v1799_v17, %v1802_v39  ;;  %v1821_v2 = vsel %vm1817_vm11, %v1805_v9, %v1820_v63  ;;  %v1829_v8 = vsel %vm1817_vm11, %v1811_v45, %v1828_v53  ;;  %v1654_v38 = vor.u32 4788187, %v1653_v22 }
 0x180   : > { %vm4082_vm0 = vcmp.le.f32.partialorder %v4577_v24, 0.7853982  ;;  %v2073_v43 = vadd.s32 4294967294, %v1435_v56  ;;  %v1830_v0 = vsel %vm1816_vm14, %v1827_v29, %v1829_v8  ;;  %v1239_v14 = vand.u32 2147483647, %v1238_v58 }
 0x181   : > { %v4094_v61 = vmul.u32.u64.low %v1831_v23, %v1826_v34  ;;  %v4095_v12 = vmul.u32.u64.high %v1831_v23, %v1826_v34, %v4094_v61  ;;  %v4098_v4 = vmul.u32.u64.low %v1831_v23, %v1830_v0  ;;  %v4099_v44 = vmul.u32.u64.high %v1831_v23, %v1830_v0, %v4098_v4 }
 0x182   : > { %vm2074_vm1 = vcmp.lt.s32.totalorder %v2073_v43, 0  ;;  %v1650_v39 = vor.u32 %v1649_v33, %v1648_v1  ;;  %v1340_v7 = vadd.s32 127, %v1339_v31  ;;  %v1755_v9 = vsub.s32 4294967266, %v4078_v51 }
 0x183   : > { %v1822_v45 = vsel %vm1816_vm14, %v1819_v40, %v1821_v2  ;;  %v1143_v55 = vsel %vm3997_vm6, %v4561_v16, %v4017_v48  ;;  %v4580_v25 = vxor.u32 2147483648, %v4001_v54  ;;  %v4581_v46 = vsub.s32 4, %v3597_v19 }
 0x184   : > { %v1241_v21 = vcvt.s32.f32 %v1234_v37  ;;  %v1655_v60 = vand.u32 2147483647, %v1654_v38  ;;  %v1335_v17 = vsub.s32 32, %v4063_v3  ;;  %v4119_v22 = vsel %vm2074_vm1, 0, %v2073_v43 }
 0x185   : > { %v1556_v58 = vsel %vm1473_vm13, %v4580_v25, %v4001_v54  ;;  %v1558_v10 = vsel %vm1473_vm13, %v4581_v46, %v3597_v19  ;;  %v1841_v48 = vadd.s32 1, %v4095_v12  ;;  %v1319_v53 = vadd.s32 %v3793_v18, %v3786_v49 }
 0x186   : > { %v1242_v63 = vmul.f32 %v1241_v21, %v1239_v14  ;;  %v1838_v1 = vmul.u32 %v1831_v23, %v1822_v45  ;;  %vm1840_vm2 = vc.u32 %v4099_v44, %v4094_v61  ;;  %v1657_v54 = vcvt.s32.f32 %v1650_v39 }
 0x187   : > { %v1341_v56 = vshll.u32 %v1340_v7, 23  ;;  %v1756_v34 = vadd.s32 127, %v1755_v9  ;;  %v1842_v19 = vsel %vm1840_vm2, %v1841_v48, %v4095_v12  ;;  %v4582_v37 = vsel %vm3997_vm6, 0, %v3991_v28 }
 0x188   : > { %v1148_v29 = vadd.s32 3, %v4582_v37  ;;  %vm1161_vm3 = vcmp.lt.s32.totalorder %v4566_v50, 0  ;;  %v1443_v33 = vsub.s32 4294967266, %v4119_v22  ;;  %v1843_v31 = vadd.s32 %v1842_v19, %v1838_v1 }
 0x189   : > { %v1560_v49 = vsel %vm4082_vm0, 0, %v1558_v10  ;;  %v4583_v18 = vand.u32 2147483647, %v4566_v50  ;;  %v1658_v24 = vmul.f32 %v1657_v54, %v1655_v60  ;;  %v1337_v43 = vshrl.u32 %v1319_v53, %v1335_v17 }
 0x18a   : > { %v1751_v36 = vsub.s32 32, %v4078_v51  ;;  %2508 = vcosq.f32 %v1143_v55  ;;  %v1559_v28 = vsel %vm4082_vm0, %v3150_v57, %v1556_v58  ;;  %v1243_v40 = vxor.u32 2147483648, %v1242_v63 }
 0x18b   : > { %vm4137_vm4 = vcmp.le.f32.partialorder %v4583_v18, 0.7853982  ;;  %v1844_v2 = vadd.s32 536870912, %v1843_v31  ;;  %v1336_v8 = vshll.u32 %v3954_v32, %v4063_v3  ;;  %v1342_v38 = vor.u32 4788187, %v1341_v56 }
 0x18c   : > { %v1735_v0 = vadd.s32 %v3875_v62, %v3872_v52  ;;  %v1757_v12 = vshll.u32 %v1756_v34, 23  ;;  %2510 = vsinq.f32 %v1143_v55  ;;  %v1245_v14 = vsub.s32 4, %v3771_v15 }
 0x18d   : > { %v1444_v4 = vadd.s32 127, %v1443_v33  ;;  %v4150_v39 = vshrl.u32 %v1844_v2, 30  ;;  %2512 = vcosq.f32 %v1559_v28  ;;  %v1659_v7 = vxor.u32 2147483648, %v1658_v24 }
 0x18e   : > { %v1338_v30 = vor.u32 %v1337_v43, %v1336_v8  ;;  %v1753_v9 = vshrl.u32 %v1735_v0, %v1751_v36  ;;  %2514 = vsinq.f32 %v1559_v28  ;;  %vm1577_vm5 = vcmp.lt.s32.totalorder %v3388_v26, 0 }
 0x18f   : > { %v1439_v32 = vsub.s32 32, %v4119_v22  ;;  %v1846_v3 = vshll.u32 %v4150_v39, 30  ;;  %v1244_v52 = vsel %vm1161_vm3, %v1243_v40, %v1242_v63  ;;  %v1343_v62 = vand.u32 2147483647, %v1342_v38 }
 0x190   : > { %v1752_v45 = vshll.u32 %v3956_v47, %v4078_v51  ;;  %v1758_v55 = vor.u32 4788187, %v1757_v12  ;;  %v1246_v25 = vsel %vm1161_vm3, %v1245_v14, %v3771_v15  ;;  %v1423_v58 = vadd.s32 %v3980_v35, %v3976_v11 }
 0x191   : > { %v1445_v46 = vshll.u32 %v1444_v4, 23  ;;  %v4164_v10 = vsub.s32 %v1843_v31, %v1846_v3  ;;  %v1564_v21 = vadd.s32 3, %v1560_v49  ;;  %v1660_v60 = vsel %vm1577_vm5, %v1659_v7, %v1658_v24 }
 0x192   : > { %v1345_v17 = vcvt.s32.f32 %v1338_v30  ;;  %v1754_v48 = vor.u32 %v1753_v9, %v1752_v45  ;;  %v1247_v47 = vsel %vm4137_vm4, %v4566_v50, %v1244_v52  ;;  %v1441_v51 = vshrl.u32 %v1423_v58, %v1439_v32 }
 0x193   : > { %v1849_v63 = vsub.s32 0, %v4164_v10  ;;  %v1248_v15 = vsel %vm4137_vm4, 0, %v1246_v25  ;;  %v4586_v11 = vand.u32 2147483647, %v3388_v26  ;;  %v1759_v1 = vand.u32 2147483647, %v1758_v55 }
 0x194   : > { %v1346_v53 = vmul.f32 %v1345_v17, %v1343_v62  ;;  %v1440_v56 = vshll.u32 %v4047_v5, %v4119_v22  ;;  %v1446_v34 = vor.u32 4788187, %v1445_v46  ;;  %v4186_v37 = vand.u32 3, %v1148_v29 }
 0x195   : > { %vm4176_vm6 = vcmp.le.f32.partialorder %v4586_v11, 0.7853982  ;;  %v2088_v19 = vmin.u32 %v1849_v63, %v4164_v10  ;;  %v4188_v33 = vand.u32 3, %v1564_v21  ;;  %2516 = vcosq.f32 %v1247_v47 }
 0x196   : > { %v1663_v54 = vsel %vm4176_vm6, %v3388_v26, %v1660_v60  ;;  %v1761_v31 = vcvt.s32.f32 %v1754_v48  ;;  %2518 = vsinq.f32 %v1247_v47  ;;  %v1252_v49 = vadd.s32 3, %v1248_v15 }
 0x197   : > { %v1442_v18 = vor.u32 %v1441_v51, %v1440_v56  ;;  %v1851_v23 = vclz %v2088_v19  ;;  %v2509_v24 = vpop.eup %2508  ;;  %v1661_v43 = vsub.s32 4, %v3832_v59  ;;  %2520 = vcosq.f32 %v1663_v54 }
 0x198   : > { %v1347_v36 = vxor.u32 2147483648, %v1346_v53  ;;  %v1762_v28 = vmul.f32 %v1761_v31, %v1759_v1  ;;  %2522 = vsinq.f32 %v1663_v54  ;;  %v1447_v5 = vand.u32 2147483647, %v1446_v34  ;;  %v4335_v54 = vld [vmem:[%s4508_s4 + $0x3] ss:$0 sm:$0xff] }
 0x199   : > { %v2089_v22 = vadd.s32 4294967294, %v1851_v23  ;;  %v2511_v40 = vpop.eup %2510  ;;  %vm1151_vm7 = vcmp.eq.s32.totalorder %v4186_v37, 0  ;;  %vm1154_vm8 = vcmp.eq.s32.totalorder %v4186_v37, 2  ;;  %vm1567_vm9 = vcmp.eq.s32.totalorder %v4188_v33, 0 }
 0x19a   : > { %v2513_v29 = vpop.eup %2512  ;;  %v4194_v2 = vand.u32 3, %v1252_v49  ;;  %vm1265_vm10 = vcmp.lt.s32.totalorder %v3385_v42, 0  ;;  %v1449_v8 = vcvt.s32.f32 %v1442_v18  ;;  %v1662_v0 = vsel %vm1577_vm5, %v1661_v43, %v3832_v59  ;;  %v4595_v18 = vld [vmem:[#allocation16_spill] sm:$0xff] }
 0x19b   : > { %vm2090_vm11 = vcmp.lt.s32.totalorder %v2089_v22, 0  ;;  %v2515_v38 = vpop.eup %2514  ;;  %v1348_v12 = vsel %vm1265_vm10, %v1347_v36, %v1346_v53  ;;  %v1763_v14 = vxor.u32 2147483648, %v1762_v28  ;;  %vm1150_vm12 = vcmp.lt.s32.totalorder %v4186_v37, 2 }
 0x19c   : > { %v1854_v4 = vsel %vm2090_vm11, 0, %v2089_v22  ;;  %v1450_v7 = vmul.f32 %v1449_v8, %v1447_v5  ;;  %v1839_v30 = vadd.s32 %v4094_v61, %v4099_v44  ;;  %v1152_v52 = vxor.u32 2147483648, %v2511_v40 }
 0x19d   : > { %v1855_v9 = vsub.s32 32, %v1854_v4  ;;  %v1859_v32 = vsub.s32 4294967266, %v1854_v4  ;;  %v1155_v62 = vxor.u32 2147483648, %v2509_v24  ;;  %v1571_v45 = vxor.u32 2147483648, %v2513_v29 }
 0x19e   : > { %v4205_v3 = vpop.f32.mrf.mxu1  ;;  %v4589_v59 = vand.u32 2147483647, %v3385_v42  ;;  %vm1566_vm14 = vcmp.lt.s32.totalorder %v4188_v33, 2  ;;  %v1664_v25 = vsel %vm4176_vm6, 0, %v1662_v0  ;;  %v1856_v61 = vshll.u32 %v4164_v10, %v1854_v4 }
 0x19f   : > { %v1857_v44 = vshrl.u32 %v1839_v30, %v1855_v9  ;;  %v1860_v58 = vadd.s32 127, %v1859_v32  ;;  %v1568_v21 = vxor.u32 2147483648, %v2515_v38  ;;  %vm1570_vm15 = vcmp.eq.s32.totalorder %v4188_v33, 2  ;;  %v4599_v30 = vld [vmem:[#allocation14_spill] sm:$0xff] }
 0x1a0   : > { %vm4209_vm13 = vcmp.le.f32.partialorder %v4589_v59, 0.7853982  ;;  %v4217_v46 = vpop.f32.mrf.mxu1  ;;  %vm1681_vm0 = vcmp.lt.s32.totalorder %v3505_v41, 0  ;;  %v1451_v48 = vxor.u32 2147483648, %v1450_v7  ;;  %v1153_v63 = vsel %vm1151_vm7, %v2509_v24, %v1152_v52  ;;  %v4247_v24 = vpop.f32.mrf.mxu0 }
 0x1a1   : > { %v1351_v60 = vsel %vm4209_vm13, %v3385_v42, %v1348_v12  ;;  %v1764_v17 = vsel %vm1681_vm0, %v1763_v14, %v1762_v28  ;;  %v1858_v47 = vor.u32 %v1857_v44, %v1856_v61  ;;  %v1861_v51 = vshll.u32 %v1860_v58, 23 }
 0x1a2   : > { %v1156_v15 = vsel %vm1154_vm8, %v1155_v62, %v2511_v40  ;;  %vm1255_vm1 = vcmp.eq.s32.totalorder %v4194_v2, 0  ;;  %v1668_v11 = vadd.s32 3, %v1664_v25  ;;  %v2517_v35 = vpop.eup %2516  ;;  %v1572_v53 = vsel %vm1570_vm15, %v1571_v45, %v2515_v38  ;;  %v4274_v52 = vpop.f32.mrf.mxu0 }
 0x1a3   : > { %2524 = vcosq.f32 %v1351_v60  ;;  %v4592_v1 = vand.u32 2147483647, %v3505_v41  ;;  %v1862_v56 = vor.u32 4788187, %v1861_v51  ;;  %v2519_v34 = vpop.eup %2518  ;;  %v1569_v31 = vsel %vm1567_vm9, %v2513_v29, %v1568_v21 }
 0x1a4   : > { %2526 = vsinq.f32 %v1351_v60  ;;  %vm1369_vm3 = vcmp.lt.s32.totalorder %v4595_v18, 0  ;;  %v2521_v23 = vpop.eup %2520  ;;  %vm1147_vm4 = vweird.f32 %v4561_v16  ;;  %vm1563_vm5 = vweird.f32 %v3150_v57 }
 0x1a5   : > { %vm4235_vm2 = vcmp.le.f32.partialorder %v4592_v1, 0.7853982  ;;  %v1349_v43 = vsub.s32 4, %v3921_v13  ;;  %v1452_v36 = vsel %vm1369_vm3, %v1451_v48, %v1450_v7  ;;  %v1863_v28 = vand.u32 2147483647, %v1862_v56  ;;  %v2523_v22 = vpop.eup %2522 }
 0x1a6   : > { %v1767_v49 = vsel %vm4235_vm2, %v3505_v41, %v1764_v17  ;;  %v1865_v5 = vcvt.s32.f32 %v1858_v47  ;;  %v1157_v29 = vsel %vm1150_vm12, %v1153_v63, %v1156_v15  ;;  %vm1254_vm6 = vcmp.lt.s32.totalorder %v4194_v2, 2 }
 0x1a7   : > { %vm1258_vm7 = vcmp.eq.s32.totalorder %v4194_v2, 2  ;;  %v1259_v8 = vxor.u32 2147483648, %v2517_v35  ;;  %v1669_v38 = vand.u32 3, %v1668_v11  ;;  %v1256_v0 = vxor.u32 2147483648, %v2519_v34 }
 0x1a8   : > { %2528 = vcosq.f32 %v1767_v49  ;;  %v4596_v12 = vand.u32 2147483647, %v4595_v18  ;;  %v1866_v4 = vmul.f32 %v1865_v5, %v1863_v28  ;;  %v1573_v37 = vsel %vm1566_vm14, %v1569_v31, %v1572_v53 }
 0x1a9   : > { %v1765_v9 = vsub.s32 4, %v4599_v30  ;;  %2530 = vsinq.f32 %v1767_v49  ;;  %v1672_v62 = vxor.u32 2147483648, %v2523_v22  ;;  %v1675_v45 = vxor.u32 2147483648, %v2521_v23 }
 0x1aa   : > { %vm4262_vm8 = vcmp.le.f32.partialorder %v4596_v12, 0.7853982  ;;  %v1350_v59 = vsel %vm1265_vm10, %v1349_v43, %v3921_v13  ;;  %v1867_v25 = vxor.u32 2147483648, %v1866_v4  ;;  %v1260_v33 = vsel %vm1258_vm7, %v1259_v8, %v2519_v34 }
 0x1ab   : > { %v4226_v10 = vpop.f32.mrf.mxu1  ;;  %v1455_v32 = vsel %vm4262_vm8, %v4595_v18, %v1452_v36  ;;  %vm1671_vm9 = vcmp.eq.s32.totalorder %v1669_v38, 0  ;;  %vm1674_vm11 = vcmp.eq.s32.totalorder %v1669_v38, 2  ;;  %vm1785_vm12 = vcmp.lt.s32.totalorder %v3543_v27, 0 }
 0x1ac   : > { %v4284_v44 = vpop.f32.mrf.mxu0  ;;  %v1257_v58 = vsel %vm1255_vm1, %v2517_v35, %v1256_v0  ;;  %2532 = vcosq.f32 %v1455_v32  ;;  %vm4290_vm14 = vcmp.le.f32.partialorder %v1783_v6, 0.7853982  ;;  %v1868_v21 = vsel %vm1785_vm12, %v1867_v25, %v1866_v4 }
 0x1ad   : > { %v4239_v19 = vpop.f32.mrf.mxu1  ;;  %v1352_v17 = vsel %vm4209_vm13, 0, %v1350_v59  ;;  %v1766_v48 = vsel %vm1681_vm0, %v1765_v9, %v4599_v30  ;;  %2534 = vsinq.f32 %v1455_v32  ;;  %v1871_v6 = vsel %vm4290_vm14, %v3543_v27, %v1868_v21 }
 0x1ae   : > { %v1673_v47 = vsel %vm1671_vm9, %v2521_v23, %v1672_v62  ;;  %v1676_v51 = vsel %vm1674_vm11, %v1675_v45, %v2523_v22  ;;  %v1453_v63 = vsub.s32 4, %v4038_v20  ;;  %2536 = vcosq.f32 %v1871_v6  ;;  %v4314_v53 = vpop.f32.mrf.mxu0 }
 0x1af   : > { %v4254_v40 = vpop.f32.mrf.mxu1  ;;  %v1158_v55 = vsel %vm1147_vm4, nan, %v1157_v29  ;;  %v1574_v11 = vsel %vm1563_vm5, nan, %v1573_v37  ;;  %v1869_v35 = vsub.s32 4, %v4150_v39  ;;  %2538 = vsinq.f32 %v1871_v6 }
 0x1b0   : > { %v1261_v1 = vsel %vm1254_vm6, %v1257_v58, %v1260_v33  ;;  %vm1670_vm10 = vcmp.lt.s32.totalorder %v1669_v38, 2  ;;  %v1356_v56 = vadd.s32 3, %v1352_v17  ;;  %v1768_v34 = vsel %vm4235_vm2, 0, %v1766_v48  ;;  %v2525_v31 = vpop.eup %2524 }
 0x1b1   : > { %v4266_v7 = vpop.f32.mrf.mxu1  ;;  %v1677_v23 = vsel %vm1670_vm10, %v1673_v47, %v1676_v51  ;;  %v2527_v43 = vpop.eup %2526  ;;  %v1887_v28 = vsub.f32 %v1158_v55, %v4561_v16  ;;  %vm1251_vm13 = vweird.f32 %v4566_v50  ;;  %vm1667_vm15 = vweird.f32 %v3388_v26 }
 0x1b2   : > { %v1454_v2 = vsel %vm1369_vm3, %v1453_v63, %v4038_v20  ;;  %v1891_v22 = vsub.f32 %v1574_v11, %v3150_v57  ;;  %v1262_v29 = vsel %vm1251_vm13, nan, %v1261_v1  ;;  %v1772_v8 = vadd.s32 3, %v1768_v34 }
 0x1b3   : > { %v4279_v61 = vpop.f32.mrf.mxu1  ;;  %v1870_v38 = vsel %vm1785_vm12, %v1869_v35, %v4150_v39  ;;  %v1678_v0 = vsel %vm1667_vm15, nan, %v1677_v23  ;;  %v1357_v12 = vand.u32 3, %v1356_v56  ;;  %v1360_v37 = vxor.u32 2147483648, %v2527_v43 }
 0x1b4   : > { %v1363_v20 = vxor.u32 2147483648, %v2525_v31  ;;  %v1456_v30 = vsel %vm4262_vm8, 0, %v1454_v2  ;;  %v1899_v45 = vmul.f32 %v4335_v54, %v1887_v28  ;;  %v1888_v59 = vsub.f32 %v1262_v29, %v4566_v50 }
 0x1b5   : > { %v4296_v60 = vpop.f32.mrf.mxu1  ;;  %v4322_v36 = vpop.f32.mrf.mxu0  ;;  %v1872_v39 = vsel %vm4290_vm14, 0, %v1870_v38  ;;  %v1903_v25 = vmul.f32 %v4335_v54, %v1891_v22  ;;  %v1892_v33 = vsub.f32 %v1678_v0, %v3388_v26  ;;  %v1773_v58 = vand.u32 3, %v1772_v8 }
 0x1b6   : > { %v2529_v4 = vpop.eup %2528  ;;  %vm1359_vm0 = vcmp.eq.s32.totalorder %v1357_v12, 0  ;;  %vm1362_vm1 = vcmp.eq.s32.totalorder %v1357_v12, 2  ;;  %v1460_v17 = vadd.s32 3, %v1456_v30  ;;  %v1876_v63 = vadd.s32 3, %v1872_v39 }
 0x1b7   : > { %v4307_v15 = vpop.f32.mrf.mxu1  ;;  %v2531_v9 = vpop.eup %2530  ;;  %v1779_v14 = vxor.u32 2147483648, %v2529_v4  ;;  %v1361_v6 = vsel %vm1359_vm0, %v2525_v31, %v1360_v37  ;;  %v1364_v47 = vsel %vm1362_vm1, %v1363_v20, %v2527_v43  ;;  %v4360_v35 = vadd.f32 %v1899_v45, %v4561_v16 }
 0x1b8   : > { %v4345_v62 = vpop.f32.mrf.mxu0  ;;  %v1776_v51 = vxor.u32 2147483648, %v2531_v9  ;;  %v1900_v1 = vmul.f32 %v4335_v54, %v1888_v59  ;;  %v4364_v34 = vadd.f32 %v1903_v25, %v3150_v57  ;;  %v1904_v23 = vmul.f32 %v4335_v54, %v1892_v33 }
 0x1b9   : > { %v4320_v49 = vpop.f32.mrf.mxu1  ;;  %v2533_v48 = vpop.eup %2532  ;;  %vm1358_vm2 = vcmp.lt.s32.totalorder %v1357_v12, 2  ;;  %vm1778_vm3 = vcmp.eq.s32.totalorder %v1773_v58, 2  ;;  %vm1775_vm4 = vcmp.eq.s32.totalorder %v1773_v58, 0  ;;  %v1461_v22 = vand.u32 3, %v1460_v17 }
 0x1ba   : > { %v2535_v55 = vpop.eup %2534  ;;  %v1365_v28 = vsel %vm1358_vm2, %v1361_v6, %v1364_v47  ;;  %v1780_v2 = vsel %vm1778_vm3, %v1779_v14, %v2531_v9  ;;  %v1777_v29 = vsel %vm1775_vm4, %v2529_v4, %v1776_v51  ;;  %v1467_v8 = vxor.u32 2147483648, %v2533_v48 }
 0x1bb   : > { %v4330_v5 = vpop.f32.mrf.mxu1  ;;  %v2537_v56 = vpop.eup %2536  ;;  %v1464_v16 = vxor.u32 2147483648, %v2535_v55  ;;  %v1877_v38 = vand.u32 3, %v1876_v63  ;;  %v4372_v57 = vadd.f32 %v1900_v1, %v4566_v50  ;;  %vm1355_vm5 = vweird.f32 %v3385_v42 }
 0x1bc   : > { %v2539_v31 = vpop.eup %2538  ;;  %v1883_v37 = vxor.u32 2147483648, %v2537_v56  ;;  %v2156_v20 = vadd.f32 %v4217_v46, %v4205_v3  ;;  %v4378_v30 = vadd.f32 %v1904_v23, %v3388_v26  ;;  %vm1771_vm6 = vweird.f32 %v3505_v41 }
 0x1bd   : > { %v4343_v32 = vpop.f32.mrf.mxu1  ;;  %v1880_v12 = vxor.u32 2147483648, %v2539_v31  ;;  %vm1774_vm7 = vcmp.lt.s32.totalorder %v1773_v58, 2  ;;  %v1366_v45 = vsel %vm1355_vm5, nan, %v1365_v28  ;;  %vm1463_vm8 = vcmp.eq.s32.totalorder %v1461_v22, 0 }
 0x1be   : > { %v1781_v50 = vsel %vm1774_vm7, %v1777_v29, %v1780_v2  ;;  %vm1466_vm9 = vcmp.eq.s32.totalorder %v1461_v22, 2  ;;  %v1465_v59 = vsel %vm1463_vm8, %v2533_v48, %v1464_v16  ;;  %vm1879_vm11 = vcmp.eq.s32.totalorder %v1877_v38, 0 }
 0x1bf   : > { %v4353_v21 = vpop.f32.mrf.mxu1  ;;  %v4355_v11 = vpop.f32.mrf.mxu0  ;;  %v1468_v39 = vsel %vm1466_vm9, %v1467_v8, %v2535_v55  ;;  %vm1882_vm12 = vcmp.eq.s32.totalorder %v1877_v38, 2  ;;  %v2159_v3 = vadd.f32 %v4239_v19, %v4226_v10  ;;  %vm1462_vm14 = vcmp.lt.s32.totalorder %v1461_v22, 2  ;;  %v4394_v10 = vld [vmem:[%s4508_s4 + $0x2] ss:$0 sm:$0xff] }
 0x1c0   : > { %v1881_v25 = vsel %vm1879_vm11, %v2537_v56, %v1880_v12  ;;  %v1884_v33 = vsel %vm1882_vm12, %v1883_v37, %v2539_v31  ;;  %v872_v58 = vadd.f32 %v2156_v20, %v4274_v52  ;;  %v2168_v14 = vadd.f32 %v4320_v49, %v4307_v15 }
 0x1c1   : > { %v4357_v13 = vpop.f32.mrf.mxu1  ;;  %v4367_v43 = vpop.f32.mrf.mxu0  ;;  %v1782_v48 = vsel %vm1771_vm6, nan, %v1781_v50  ;;  %v1889_v47 = vsub.f32 %v1366_v45, %v3385_v42  ;;  %vm1459_vm10 = vweird.f32 %v4595_v18  ;;  %v1469_v51 = vsel %vm1462_vm14, %v1465_v59, %v1468_v39 }
 0x1c2   : > { %vm1878_vm13 = vcmp.lt.s32.totalorder %v1877_v38, 2  ;;  %v892_v52 = vadd.f32 %v2168_v14, %v4345_v62  ;;  %v877_v55 = vadd.f32 %v4247_v24, %v2159_v3  ;;  %v2171_v1 = vadd.f32 %v4343_v32, %v4330_v5 }
 0x1c3   : > { %v1885_v63 = vsel %vm1878_vm13, %v1881_v25, %v1884_v33  ;;  %v1893_v31 = vsub.f32 %v1782_v48, %v3505_v41  ;;  %vm1875_vm15 = vweird.f32 %v3543_v27  ;;  %v1470_v22 = vsel %vm1459_vm10, nan, %v1469_v51 }
 0x1c4   : > { %v4369_v0 = vpop.f32.mrf.mxu1  ;;  %v2162_v29 = vadd.f32 %v4266_v7, %v4254_v40  ;;  %v897_v24 = vadd.f32 %v4322_v36, %v2171_v1  ;;  %v2174_v5 = vadd.f32 %v4357_v13, %v4353_v21  ;;  %v1886_v8 = vsel %vm1875_vm15, nan, %v1885_v63 }
 0x1c5   : > { %v2210_v4 = vpop.f32.mrf.mxu0  ;;  %v1901_v50 = vmul.f32 %v4335_v54, %v1889_v47  ;;  %v1905_v7 = vmul.f32 %v4335_v54, %v1893_v31  ;;  %v1890_v36 = vsub.f32 %v1470_v22, %v4595_v18  ;;  %v1894_v25 = vsub.f32 %v1886_v8, %v3543_v27 }
 0x1c6   : > { %v4381_v9 = vpop.f32.mrf.mxu1  ;;  %v902_v39 = vadd.f32 %v2174_v5, %v4367_v43 }
 0x1c7   : > { %v2211_v26 = vpop.f32.mrf.mxu0  ;;  %v2177_v3 = vadd.f32 %v4381_v9, %v4369_v0  ;;  %v1906_v47 = vmul.f32 %v4335_v54, %v1894_v25 }
 0x1c8   : > { %v2222_v46 = vpop.f32.mrf.mxu1  ;;  %v2212_v17 = vadd.f32 %v2211_v26, %v2210_v4  ;;  %v882_v4 = vadd.f32 %v2162_v29, %v4314_v53  ;;  %v2165_v53 = vadd.f32 %v4296_v60, %v4279_v61  ;;  %v1909_v60 = vadd.f32 %v1901_v50, %v3385_v42 }
 0x1c9   : > { %v2213_v19 = vpop.f32.mrf.mxu0  ;;  %v1914_v1 = vadd.f32 %v1906_v47, %v3543_v27 }
 0x1ca   : > { %v2223_v6 = vpop.f32.mrf.mxu1  ;;  %v977_v15 = vadd.f32 %v2212_v17, %v872_v58  ;;  %v887_v61 = vadd.f32 %v4284_v44, %v2165_v53  ;;  %v1902_v17 = vmul.f32 %v4335_v54, %v1890_v36  ;;  %v1913_v44 = vadd.f32 %v1905_v7, %v3505_v41 }
 0x1cb   : > { %v2224_v49 = vadd.f32 %v2223_v6, %v2222_v46  ;;  %v2214_v56 = vpop.f32.mrf.mxu0  ;;  %v907_v6 = vadd.f32 %v4355_v11, %v2177_v3 }
 0x1cc   : > { %v2225_v23 = vpop.f32.mrf.mxu1  ;;  %v1020_v28 = vadd.f32 %v4394_v10, %v977_v15  ;;  %v2215_v62 = vadd.f32 %v2214_v56, %v2213_v19  ;;  %v1910_v11 = vadd.f32 %v1902_v17, %v4595_v18 }
 0x1cd   : > { %v997_v2 = vadd.f32 %v2224_v49, %v892_v52  ;;  %v2216_v32 = vpop.f32.mrf.mxu0 }
 0x1ce   : > { %v2226_v16 = vpop.f32.mrf.mxu1  ;;  %v1915_v38 = vadd.f32 %v4360_v35, %v1020_v28  ;;  %v982_v37 = vadd.f32 %v2215_v62, %v877_v55 }
 0x1cf   : > { %v1024_v12 = vadd.f32 %v4394_v10, %v997_v2  ;;  %v2227_v20 = vadd.f32 %v2226_v16, %v2225_v23  ;;  %v2217_v45 = vpop.f32.mrf.mxu0 }
 0x1d0   : > { %v2228_v40 = vpop.f32.mrf.mxu1  ;;  %1923 = vst [vmem:[%s4420_s26] sm:$0xff] %v1915_v38  ;;  %v1021_v13 = vadd.f32 %v4394_v10, %v982_v37  ;;  %v2218_v59 = vadd.f32 %v2217_v45, %v2216_v32 }
 0x1d1   : > { %v1919_v21 = vadd.f32 %v4364_v34, %v1024_v12  ;;  %v1002_v35 = vadd.f32 %v2227_v20, %v897_v24  ;;  %v2219_v26 = vpop.f32.mrf.mxu0 }
 0x1d2   : > { %v2229_v46 = vpop.f32.mrf.mxu1  ;;  %v1916_v34 = vadd.f32 %v4372_v57, %v1021_v13  ;;  %v987_v58 = vadd.f32 %v2218_v59, %v882_v4 }
 0x1d3   : > { %1927 = vst [vmem:[%s4420_s26 + $0x20] sm:$0xff] %v1919_v21  ;;  %v1025_v33 = vadd.f32 %v4394_v10, %v1002_v35  ;;  %v2230_v14 = vadd.f32 %v2229_v46, %v2228_v40  ;;  %v2220_v43 = vpop.f32.mrf.mxu0 }
 0x1d4   : > { %v2231_v0 = vpop.f32.mrf.mxu1  ;;  %1924 = vst [vmem:[%s4420_s26 + $0x8] sm:$0xff] %v1916_v34  ;;  %v1022_v48 = vadd.f32 %v4394_v10, %v987_v58  ;;  %v2221_v19 = vadd.f32 %v2220_v43, %v2219_v26 }
 0x1d5   : > { %v1920_v9 = vadd.f32 %v4378_v30, %v1025_v33  ;;  %v1007_v57 = vadd.f32 %v2230_v14, %v902_v39 }
 0x1d6   : > { %v2232_v42 = vpop.f32.mrf.mxu1  ;;  %v1917_v51 = vadd.f32 %v1909_v60, %v1022_v48  ;;  %v992_v30 = vadd.f32 %v2221_v19, %v887_v61 }
 0x1d7   : > { %1928 = vst [vmem:[%s4420_s26 + $0x28] sm:$0xff] %v1920_v9  ;;  %v1026_v52 = vadd.f32 %v4394_v10, %v1007_v57  ;;  %v2233_v15 = vadd.f32 %v2232_v42, %v2231_v0 }
 0x1d8   : > { %1925 = vst [vmem:[%s4420_s26 + $0x10] sm:$0xff] %v1917_v51  ;;  %v1023_v63 = vadd.f32 %v4394_v10, %v992_v30 }
 0x1d9   : > { %v1921_v49 = vadd.f32 %v1913_v44, %v1026_v52  ;;  %v1012_v41 = vadd.f32 %v2233_v15, %v907_v6 }
 0x1da   : > { %v1918_v54 = vadd.f32 %v1910_v11, %v1023_v63 }
 0x1db   : > { %1929 = vst [vmem:[%s4420_s26 + $0x30] sm:$0xff] %v1921_v49  ;;  %v1027_v55 = vadd.f32 %v4394_v10, %v1012_v41 }
 0x1dc   : > { %1926 = vst [vmem:[%s4420_s26 + $0x18] sm:$0xff] %v1918_v54 }
 0x1dd   : > { %v1922_v18 = vadd.f32 %v1914_v1, %v1027_v55 }
 0x1df   : > { %1930 = vst [vmem:[%s4420_s26 + $0x38] sm:$0xff] %v1922_v18 }
 0x1e0   : > { %2606 = shalt.err (!%p2603_p1)
}
 0x1e1   : > { %s2607_s7 = scalar_lea.hbm %s4456_s10, 1024  ;;  %s2611_s17 = scalar_lea.hbm %s4509_s5, 2048 }
 0x1e2   : > { %p2608_p2 = scmp.ne.s32.totalorder %s4456_s10, %s2607_s7  ;;  %p2612_p5 = scmp.lt.s32.totalorder %s4456_s10, %s4509_s5 }
 0x1e3   : > { %p2613_p6 = scmp.lt.s32.totalorder %s2611_s17, %s2607_s7 }
 0x1e4   : > { %p2609_p3 = pnand %p2608_p2, %p4602_p13 }
 0x1e5   : > { %p2614_p10 = por %p2613_p6, %p2612_p5 }
 0x1e6   : > { %p2610_p9 = pneg %p2609_p3 }
 0x1e8   : > { %p2615_p12 = pnand %p2614_p10, %p2610_p9 }
 0x1ea   : > { %2618 = shalt.err (!%p2615_p12)
}
 0x1eb   : > { %s2678_s26 = smov 128   ;;  %s2679_s30 = smov 8  }
 0x1ec   : > { %2366 = dma.vmem_to_hbm [thread:$0]  (%p4602_p13), %s4458_s6, 1024, %s4456_s10, %s4464_s22, %s2678_s26, %s2678_s26, %s2679_s30  }
 0x1ed PF: > { %p2383_p4 = scmp.ge.s32.totalorder %s2661_s21, 2  ;;  %s1960_s8 = sand.u32 1, %s2649_s18  }
 0x1ee   : > { %p4603_p7 = scmp.ne.s32.totalorder %s4545_s29, 0  ;;  %s1961_s9 = scalar_lea.sflag [#allocation4], %s1960_s8 }
 0x1f0   : > { %p2376_p8 = pnand %p2383_p4, %p4603_p7 }
 0x1f2   : > { %p2377_p11 = pneg %p2376_p8 }
 0x1f4   : > { %2644 = dma.done.wait (%p2377_p11), %s1961_s9, 1024  }
 0x1f5   : > { %2646 = vsyncadd (%p2377_p11), %s1961_s9, 4294966272  ;;  %p17_p0 = scmp.ge.s32.totalorder %s2735_s24, 4   ;;  %s4604_s18 = smov %s2653_s19 }
 0x1f6   : > { %s4605_s19 = smov %s2657_s20  ;;  %s4606_s20 = smov %s2746_s27 }
 0x1f7   : > { %s4607_s21 = smov %s2735_s24  ;;  %19 = sbr.rel (!%p17_p0) target bundleno = 5 (0x5), region = 86 }
 0x1fc   :  { %1966 = vsyncpa [#allocation3], 1 }
 0x1fd   :  { %1968 = vsyncpa [#allocation3 + $0x1], 1 }
 0x1fe   :  { %1969 = vsyncpa [#allocation6], 1 }
 0x1ff   :  { %1970 = vsyncpa [#allocation4], 1 }
 0x200   :  { %1972 = vsyncpa [#allocation4 + $0x1], 1 }

</bundles_post_ra>
